<compile_context>
chip_gen: v6e
topology: v6e:2x2x1
jax: 0.10.0
libtpu: 0.0.40
codegen_flags: <defaults>
</compile_context>

<pallas_src>
import jax
import jax.numpy as jnp
from jax.experimental import pallas as pl
from jax.experimental.pallas import tpu as pltpu

D_IN, D_HID, D_OUT = 400, 200, 164
# Lane-aligned (multiple-of-128) padded dims.
D_IN_P, D_HID_P, D_OUT_P = 512, 256, 256

TB = 256  # batch tile: >=256 rows fills the v6e/v7x 256-wide MXU, multiple of 8.


def _mlp_kernel(x_ref, w1_ref, b1_ref, w2_ref, b2_ref, o_ref):
    # First linear: [TB, 512]bf16 @ [512, 256]bf16 -> f32 accumulate on MXU.
    h = jnp.dot(x_ref[...], w1_ref[...], preferred_element_type=jnp.float32)
    h = h + b1_ref[...]
    # LeakyReLU(0.1): single vmax+vmul instead of cmp/select.
    h = jnp.maximum(h, 0.1 * h)
    # Second linear: bf16 operands, f32 accumulation.
    z = jnp.dot(h.astype(jnp.bfloat16), w2_ref[...],
                preferred_element_type=jnp.float32)
    z = z + b2_ref[...]
    # Sigmoid: exp and approx reciprocal both issue on the EUP slot.
    o_ref[...] = pl.reciprocal(1.0 + jnp.exp(-z), approx=True).astype(o_ref.dtype)


def predict_genre_forward(x, w1, b1, w2, b2, *, tb=TB):
    """x: [B, 400]. w1: [400, 200], b1: [200], w2: [200, 164], b2: [164].

    Weights are stored as [in, out] (transpose of PyTorch's [out, in]); the
    math x @ W + b is identical to nn.Linear's x @ W.T + b.
    """
    B = x.shape[0]
    n_tiles = pl.cdiv(B, tb)
    B_pad = n_tiles * tb

    # Zero-pad to lane-aligned shapes; cast matmul operands to bf16.
    x_p = jnp.zeros((B_pad, D_IN_P), jnp.bfloat16).at[:B, :D_IN].set(
        x.astype(jnp.bfloat16))
    w1_p = jnp.zeros((D_IN_P, D_HID_P), jnp.bfloat16).at[:D_IN, :D_HID].set(
        w1.astype(jnp.bfloat16))
    w2_p = jnp.zeros((D_HID_P, D_OUT_P), jnp.bfloat16).at[:D_HID, :D_OUT].set(
        w2.astype(jnp.bfloat16))
    b1_p = jnp.zeros((1, D_HID_P), jnp.float32).at[0, :D_HID].set(
        b1.astype(jnp.float32))
    b2_p = jnp.zeros((1, D_OUT_P), jnp.float32).at[0, :D_OUT].set(
        b2.astype(jnp.float32))

    out = pl.pallas_call(
        _mlp_kernel,
        out_shape=jax.ShapeDtypeStruct((B_pad, D_OUT_P), jnp.float32),
        grid=(n_tiles,),
        in_specs=[
            # Streamed batch tile of x (double-buffered by the pipeline).
            pl.BlockSpec((tb, D_IN_P), lambda i: (i, 0)),
            # Weights / biases: constant index_map -> resident in VMEM.
            pl.BlockSpec((D_IN_P, D_HID_P), lambda i: (0, 0)),
            pl.BlockSpec((1, D_HID_P), lambda i: (0, 0)),
            pl.BlockSpec((D_HID_P, D_OUT_P), lambda i: (0, 0)),
            pl.BlockSpec((1, D_OUT_P), lambda i: (0, 0)),
        ],
        out_specs=pl.BlockSpec((tb, D_OUT_P), lambda i: (i, 0)),
        compiler_params=pltpu.CompilerParams(
            dimension_semantics=("parallel",),
            vmem_limit_bytes=32 * 1024 * 1024,
        ),
    )(x_p, w1_p, b1_p, w2_p, b2_p)

    # Strip batch and lane padding.
    return out[:B, :D_OUT]


def _reference_forward(x, w1, b1, w2, b2):
    h = x @ w1 + b1
    h = jnp.where(h > 0, h, 0.1 * h)
    z = h @ w2 + b2
    return jax.nn.sigmoid(z)


if __name__ == "__main__":
    key = jax.random.PRNGKey(0)
    k_x, k_w1, k_b1, k_w2, k_b2 = jax.random.split(key, 5)

    B = 8  # small demo batch
    x = jax.random.normal(k_x, (B, D_IN), dtype=jnp.float32)

    # Deterministic parameter init (PyTorch-Linear-like uniform bounds),
    # stored as [in, out].
    bound1 = 1.0 / (D_IN ** 0.5)
    bound2 = 1.0 / (D_HID ** 0.5)
    w1 = jax.random.uniform(k_w1, (D_IN, D_HID), jnp.float32, -bound1, bound1)
    b1 = jax.random.uniform(k_b1, (D_HID,), jnp.float32, -bound1, bound1)
    w2 = jax.random.uniform(k_w2, (D_HID, D_OUT), jnp.float32, -bound2, bound2)
    b2 = jax.random.uniform(k_b2, (D_OUT,), jnp.float32, -bound2, bound2)

    out = predict_genre_forward(x, w1, b1, w2, b2)
    out = jax.block_until_ready(out)

    ref = _reference_forward(x, w1, b1, w2, b2)
    assert out.shape == (B, D_OUT)
    # Tolerance loosened for bf16 matmul operands + approx-reciprocal sigmoid
    # (outputs are in [0, 1], so 2e-2 absolute is a comfortable bound).
    assert jnp.allclose(out, ref, atol=2e-2, rtol=2e-2), "mismatch vs reference"

    print("KERNEL_OK")
</pallas_src>

<mosaic_0001>
module attributes {stable_mosaic.version = 11 : i64} {
  func.func @_mlp_kernel(%arg0: i32, %arg1: memref<256x512xbf16, #tpu.memory_space<vmem>>, %arg2: memref<512x256xbf16, #tpu.memory_space<vmem>>, %arg3: memref<1x256xf32, #tpu.memory_space<vmem>>, %arg4: memref<256x256xbf16, #tpu.memory_space<vmem>>, %arg5: memref<1x256xf32, #tpu.memory_space<vmem>>, %arg6: memref<256x256xf32, #tpu.memory_space<vmem>>) attributes {dimension_semantics = [#tpu.dimension_semantics<parallel>], iteration_bounds = array<i64: 1>, scalar_prefetch = 0 : i64, scratch_operands = 0 : i64, tpu.core_type = #tpu.core_type<tc>, window_params = [{transform_indices = @transform_0, window_bounds = array<i64: 256, 512>}, {pipeline_mode = #tpu.pipeline_mode<synchronous>, transform_indices = @transform_1, window_bounds = array<i64: 512, 256>}, {pipeline_mode = #tpu.pipeline_mode<synchronous>, transform_indices = @transform_2, window_bounds = array<i64: 1, 256>}, {pipeline_mode = #tpu.pipeline_mode<synchronous>, transform_indices = @transform_3, window_bounds = array<i64: 256, 256>}, {pipeline_mode = #tpu.pipeline_mode<synchronous>, transform_indices = @transform_4, window_bounds = array<i64: 1, 256>}, {transform_indices = @transform_5, window_bounds = array<i64: 256, 256>}]} {
    %c0 = arith.constant 0 : index
    %c0_0 = arith.constant 0 : index
    %0 = vector.load %arg1[%c0, %c0_0] : memref<256x512xbf16, #tpu.memory_space<vmem>>, vector<256x512xbf16>
    %c0_1 = arith.constant 0 : index
    %c0_2 = arith.constant 0 : index
    %1 = vector.load %arg2[%c0_1, %c0_2] : memref<512x256xbf16, #tpu.memory_space<vmem>>, vector<512x256xbf16>
    %cst = arith.constant dense<0.000000e+00> : vector<256x256xf32>
    %2 = tpu.matmul %0, %1, %cst {dimension_numbers = #tpu.dot_dimension_numbers<[1], [0], [0], [1], [0, 0, 1, 1], [], []>} : vector<256x512xbf16>, vector<512x256xbf16>, vector<256x256xf32> -> vector<256x256xf32>
    %c0_3 = arith.constant 0 : index
    %c0_4 = arith.constant 0 : index
    %3 = vector.load %arg3[%c0_3, %c0_4] : memref<1x256xf32, #tpu.memory_space<vmem>>, vector<1x256xf32>
    %4 = vector.broadcast %3 : vector<1x256xf32> to vector<256x256xf32>
    %5 = arith.addf %2, %4 : vector<256x256xf32>
    %cst_5 = arith.constant 1.000000e-01 : f32
    %6 = vector.broadcast %cst_5 : f32 to vector<256x256xf32>
    %7 = arith.mulf %6, %5 : vector<256x256xf32>
    %8 = arith.maximumf %5, %7 : vector<256x256xf32>
    %9 = arith.truncf %8 : vector<256x256xf32> to vector<256x256xbf16>
    %c0_6 = arith.constant 0 : index
    %c0_7 = arith.constant 0 : index
    %10 = vector.load %arg4[%c0_6, %c0_7] : memref<256x256xbf16, #tpu.memory_space<vmem>>, vector<256x256xbf16>
    %cst_8 = arith.constant dense<0.000000e+00> : vector<256x256xf32>
    %11 = tpu.matmul %9, %10, %cst_8 {dimension_numbers = #tpu.dot_dimension_numbers<[1], [0], [0], [1], [0, 0, 1, 1], [], []>} : vector<256x256xbf16>, vector<256x256xbf16>, vector<256x256xf32> -> vector<256x256xf32>
    %c0_9 = arith.constant 0 : index
    %c0_10 = arith.constant 0 : index
    %12 = vector.load %arg5[%c0_9, %c0_10] : memref<1x256xf32, #tpu.memory_space<vmem>>, vector<1x256xf32>
    %13 = vector.broadcast %12 : vector<1x256xf32> to vector<256x256xf32>
    %14 = arith.addf %11, %13 : vector<256x256xf32>
    %cst_11 = arith.constant 0.000000e+00 : f32
    %15 = vector.broadcast %cst_11 : f32 to vector<256x256xf32>
    %16 = arith.subf %15, %14 : vector<256x256xf32>
    %17 = math.exp %16 : vector<256x256xf32>
    %cst_12 = arith.constant 1.000000e+00 : f32
    %18 = vector.broadcast %cst_12 : f32 to vector<256x256xf32>
    %19 = arith.addf %18, %17 : vector<256x256xf32>
    %20 = tpu.reciprocal %19 {approx = true} : vector<256x256xf32> -> vector<256x256xf32>
    %c0_13 = arith.constant 0 : index
    %c0_14 = arith.constant 0 : index
    %21 = vector.load %arg6[%c0_13, %c0_14] : memref<256x256xf32, #tpu.memory_space<vmem>>, vector<256x256xf32>
    tpu.vector_store %arg6[%c0_13, %c0_14], %20 {strides = array<i32>} : memref<256x256xf32, #tpu.memory_space<vmem>>, vector<256x256xf32>,
    return
  }
  func.func @transform_0(%arg0: i32) -> (i32, i32) {
    %c0_i32 = arith.constant 0 : i32
    %c0_i32_0 = arith.constant 0 : i32
    return %arg0, %c0_i32 : i32, i32
  }
  func.func @transform_1(%arg0: i32) -> (i32, i32) {
    %c0_i32 = arith.constant 0 : i32
    %c0_i32_0 = arith.constant 0 : i32
    %c0_i32_1 = arith.constant 0 : i32
    return %c0_i32, %c0_i32_0 : i32, i32
  }
  func.func @transform_2(%arg0: i32) -> (i32, i32) {
    %c0_i32 = arith.constant 0 : i32
    %c0_i32_0 = arith.constant 0 : i32
    %c0_i32_1 = arith.constant 0 : i32
    return %c0_i32, %c0_i32_0 : i32, i32
  }
  func.func @transform_3(%arg0: i32) -> (i32, i32) {
    %c0_i32 = arith.constant 0 : i32
    %c0_i32_0 = arith.constant 0 : i32
    %c0_i32_1 = arith.constant 0 : i32
    return %c0_i32, %c0_i32_0 : i32, i32
  }
  func.func @transform_4(%arg0: i32) -> (i32, i32) {
    %c0_i32 = arith.constant 0 : i32
    %c0_i32_0 = arith.constant 0 : i32
    %c0_i32_1 = arith.constant 0 : i32
    return %c0_i32, %c0_i32_0 : i32, i32
  }
  func.func @transform_5(%arg0: i32) -> (i32, i32) {
    %c0_i32 = arith.constant 0 : i32
    %c0_i32_0 = arith.constant 0 : i32
    return %arg0, %c0_i32 : i32, i32
  }
}

</mosaic_0001>

<bundles_post_ra>
// kernel: tpu_custom_call.1
= control target key start
LH: loop header
LB: loop body
LE: loop exit
PB: predicated region body
PF: predicated region fallthrough
CT: control target
= control target key end

     0   :  { %10 = vsyncpa [#allocation3], 0  ;;  %s3344_s0 = inlined_call_operand.hbm [shape: bf16[256,512], index: 0, kind: input, shape index: {}]   ;;  %s3345_s1 = inlined_call_operand.hbm [shape: bf16[512,256], index: 1, kind: input, shape index: {}]   ;;  %s3346_s2 = inlined_call_operand.vmem [shape: f32[1,256], index: 2, kind: input, shape index: {}]   ;;  %s3347_s3 = inlined_call_operand.hbm [shape: bf16[256,256], index: 3, kind: input, shape index: {}]   ;;  %s3348_s4 = inlined_call_operand.vmem [shape: f32[1,256], index: 4, kind: input, shape index: {}]   ;;  %s3349_s5 = inlined_call_operand.hbm [shape: f32[256,256], index: 5, kind: output, shape index: {}]  }
   0x1   :  { %11 = vsyncpa [#allocation6], 0 }
   0x2   :  { %12 = vsyncpa [#allocation4], 0  ;;  %s2969_s18 = smov [#allocation5]  }
   0x3   :  { %s30_s19 = sshll.u32 %s2969_s18, 4  ;;  %s31_s19 = int_to_ptr.vmem [resolvable:$true] %s30_s19 }
   0x4   :  { %s2891_s20 = scalar_lea.vmem %s31_s19, 8192  ;;  %p2896_p1 = scmp.lt.s32.totalorder %s31_s19, %s31_s19 }
   0x5   :  { %p2892_p0 = scmp.ne.s32.totalorder %s31_s19, %s2891_s20  ;;  %p2897_p2 = scmp.lt.s32.totalorder %s2891_s20, %s2891_s20 }
   0x7   :  { %p2898_p3 = por %p2897_p2, %p2896_p1 }
   0x9   :  { %p2899_p4 = pnand %p2898_p3, %p2892_p0 }
   0xb   :  { %2902 = shalt.err (!%p2899_p4)
}
   0xc   :  { %s2970_s21 = smov 128   ;;  %s2971_s22 = smov 8  }
   0xd   :  { %36 = dma.hbm_to_vmem [thread:$0]  %s3345_s1, 8192, %s31_s19, [#allocation6], %s2970_s21, %s2970_s21, %s2971_s22  }
   0xe   :  { %s2972_s25 = smov [#allocation2]  }
   0xf   :  { %s18_s26 = sshll.u32 %s2972_s25, 4  ;;  %s19_s26 = int_to_ptr.vmem [resolvable:$true] %s18_s26 }
  0x10   :  { %s2911_s27 = scalar_lea.vmem %s19_s26, 8192  ;;  %p2916_p6 = scmp.lt.s32.totalorder %s19_s26, %s19_s26 }
  0x11   :  { %p2912_p5 = scmp.ne.s32.totalorder %s19_s26, %s2911_s27  ;;  %p2917_p7 = scmp.lt.s32.totalorder %s2911_s27, %s2911_s27 }
  0x13   :  { %p2918_p8 = por %p2917_p7, %p2916_p6 }
  0x15   :  { %p2919_p9 = pnand %p2918_p8, %p2912_p5 }
  0x17   :  { %2922 = shalt.err (!%p2919_p9)
}
  0x18   :  { %s2973_s28 = smov 256   ;;  %s2974_s29 = smov 16  }
  0x19   :  { %24 = dma.hbm_to_vmem [thread:$0]  %s3344_s0, 8192, %s19_s26, [#allocation3], %s2973_s28, %s2973_s28, %s2974_s29  }
  0x1a   :  { %s2975_s1 = smov [#allocation7]  }
  0x1b   :  { %s44_s7 = sshll.u32 %s2975_s1, 4  ;;  %s45_s7 = int_to_ptr.vmem [resolvable:$true] %s44_s7 }
  0x1c   :  { %s2931_s8 = scalar_lea.vmem %s45_s7, 4096  ;;  %p2936_p11 = scmp.lt.s32.totalorder %s45_s7, %s45_s7 }
  0x1d   :  { %p2932_p10 = scmp.ne.s32.totalorder %s45_s7, %s2931_s8  ;;  %p2937_p12 = scmp.lt.s32.totalorder %s2931_s8, %s2931_s8 }
  0x1f   :  { %p2938_p13 = por %p2937_p12, %p2936_p11 }
  0x21   :  { %p2939_p0 = pnand %p2938_p13, %p2932_p10 }
  0x23   :  { %2942 = shalt.err (!%p2939_p0)
}
  0x24   :  { %50 = dma.hbm_to_vmem [thread:$0]  %s3347_s3, 4096, %s45_s7, [#allocation6], %s2970_s21, %s2970_s21, %s2971_s22  }
  0x25   :  { %2963 = dma.done.wait [#allocation3], 8192  }
  0x26   :  { %2964 = vsyncadd [#allocation3], 4294959104 }
  0x27   :  { %2965 = dma.done.wait [#allocation6], 12288  }
  0x28   :  { %2966 = vsyncadd [#allocation6], 4294955008  ;;  %v2387_v0 = vld [vmem:[#allocation5 + $0x74] ss:$8 sps:$4 sm:$0xff]   ;;  %v2389_v1 = vld [vmem:[#allocation5 + $0x70] ss:$8 sps:$4 sm:$0xff]  }
  0x29   :  { %2347 = vmatprep.subr.bf16.mxu1 %v2387_v0  ;;  %v2390_v2 = vld [vmem:[#allocation5 + $0x64] ss:$8 sps:$4 sm:$0xff]   ;;  %842 = vmatprep.subr.bf16.mxu0 %v2387_v0  ;;  %v2392_v3 = vld [vmem:[#allocation5 + $0x60] ss:$8 sps:$4 sm:$0xff]   ;;  %v2393_v4 = vld [vmem:[#allocation5 + $0x54] ss:$8 sps:$4 sm:$0xff]  }
  0x2a   :  { %2363 = vmatpush1.bf16.msra.mxu1 %v2389_v1  ;;  %843 = vmatpush1.bf16.msra.mxu0 %v2389_v1  ;;  %v2395_v5 = vld [vmem:[#allocation5 + $0x50] ss:$8 sps:$4 sm:$0xff]   ;;  %v2396_v6 = vld [vmem:[#allocation5 + $0x44] ss:$8 sps:$4 sm:$0xff]   ;;  %v2398_v7 = vld [vmem:[#allocation5 + $0x40] ss:$8 sps:$4 sm:$0xff]  }
  0x2b   :  { %2348 = vmatprep.subr.bf16.mxu1 %v2390_v2  ;;  %844 = vmatprep.subr.bf16.mxu0 %v2390_v2  ;;  %v2399_v8 = vld [vmem:[#allocation5 + $0x34] ss:$8 sps:$4 sm:$0xff]   ;;  %v2401_v9 = vld [vmem:[#allocation5 + $0x30] ss:$8 sps:$4 sm:$0xff]   ;;  %v2402_v10 = vld [vmem:[#allocation5 + $0x24] ss:$8 sps:$4 sm:$0xff]  }
  0x2c   :  { %v2404_v11 = vld [vmem:[#allocation5 + $0x20] ss:$8 sps:$4 sm:$0xff]   ;;  %v2405_v12 = vld [vmem:[#allocation5 + $0x14] ss:$8 sps:$4 sm:$0xff]   ;;  %v2407_v14 = vld [vmem:[#allocation5 + $0x10] ss:$8 sps:$4 sm:$0xff]  }
  0x2d   :  { %v2437_v13 = vld [vmem:[#allocation2 + $0x104] ss:$16 sps:$4 sm:$0xff]   ;;  %v2410_v16 = vld [vmem:[#allocation5] ss:$8 sps:$4 sm:$0xff]   ;;  %v2413_v18 = vld [vmem:[#allocation5 + $0xf0] ss:$8 sps:$4 sm:$0xff]  }
  0x2e   :  { %2364 = vmatpush1.bf16.msra.mxu1 %v2392_v3  ;;  %845 = vmatpush1.bf16.msra.mxu0 %v2392_v3  ;;  %v2408_v15 = vld [vmem:[#allocation5 + $0x4] ss:$8 sps:$4 sm:$0xff]   ;;  %v2411_v17 = vld [vmem:[#allocation5 + $0xf4] ss:$8 sps:$4 sm:$0xff]   ;;  %v2416_v20 = vld [vmem:[#allocation5 + $0xe0] ss:$8 sps:$4 sm:$0xff]  }
  0x2f   :  { %2349 = vmatprep.subr.bf16.mxu1 %v2393_v4  ;;  %846 = vmatprep.subr.bf16.mxu0 %v2393_v4  ;;  %v2414_v19 = vld [vmem:[#allocation5 + $0xe4] ss:$8 sps:$4 sm:$0xff]   ;;  %v2417_v21 = vld [vmem:[#allocation5 + $0xd4] ss:$8 sps:$4 sm:$0xff]   ;;  %v2419_v22 = vld [vmem:[#allocation5 + $0xd0] ss:$8 sps:$4 sm:$0xff]  }
  0x30   :  { %954 = vmatprep.mubr.bf16.mxu1 %v2437_v13  ;;  %v2420_v23 = vld [vmem:[#allocation5 + $0xc4] ss:$8 sps:$4 sm:$0xff]   ;;  %v2422_v24 = vld [vmem:[#allocation5 + $0xc0] ss:$8 sps:$4 sm:$0xff]   ;;  %v2423_v25 = vld [vmem:[#allocation5 + $0xb4] ss:$8 sps:$4 sm:$0xff]  }
  0x31   :  { %v2425_v26 = vld [vmem:[#allocation5 + $0xb0] ss:$8 sps:$4 sm:$0xff]   ;;  %v2426_v27 = vld [vmem:[#allocation5 + $0xa4] ss:$8 sps:$4 sm:$0xff]   ;;  %v2428_v28 = vld [vmem:[#allocation5 + $0xa0] ss:$8 sps:$4 sm:$0xff]  }
  0x32   :  { %2365 = vmatpush1.bf16.msra.mxu1 %v2395_v5  ;;  %847 = vmatpush1.bf16.msra.mxu0 %v2395_v5  ;;  %v2502_v29 = vld [vmem:[#allocation2 + $0x4] ss:$16 sps:$4 sm:$0xff]   ;;  %v2431_v31 = vld [vmem:[#allocation5 + $0x90] ss:$8 sps:$4 sm:$0xff]   ;;  %v2434_v33 = vld [vmem:[#allocation5 + $0x80] ss:$8 sps:$4 sm:$0xff]  }
  0x33   :  { %2350 = vmatprep.subr.bf16.mxu1 %v2396_v6  ;;  %848 = vmatprep.subr.bf16.mxu0 %v2396_v6  ;;  %v2429_v30 = vld [vmem:[#allocation5 + $0x94] ss:$8 sps:$4 sm:$0xff]   ;;  %v2432_v32 = vld [vmem:[#allocation5 + $0x84] ss:$8 sps:$4 sm:$0xff]   ;;  %v2435_v35 = vld [vmem:[#allocation2 + $0x100] ss:$16 sps:$4 sm:$0xff]  }
  0x34   :  { %874 = vmatprep.mubr.bf16.mxu0 %v2502_v29  ;;  %v2440_v34 = vld [vmem:[#allocation5 + $0x174] ss:$8 sps:$4 sm:$0xff]   ;;  %v2438_v36 = vld [vmem:[#allocation5 + $0x170] ss:$8 sps:$4 sm:$0xff]   ;;  %v2443_v39 = vld [vmem:[#allocation5 + $0x164] ss:$8 sps:$4 sm:$0xff]  }
  0x35   :  { %v2500_v37 = vld [vmem:[#allocation2] ss:$16 sps:$4 sm:$0xff]   ;;  %v2444_v38 = vld [vmem:[#allocation2 + $0x124] ss:$16 sps:$4 sm:$0xff]  }
  0x36   :  { %2366 = vmatpush1.bf16.msra.mxu1 %v2398_v7  ;;  %849 = vmatpush1.bf16.msra.mxu0 %v2398_v7  ;;  %v2513_v40 = vld [vmem:[#allocation2 + $0x24] ss:$16 sps:$4 sm:$0xff]   ;;  %v2441_v41 = vld [vmem:[#allocation5 + $0x160] ss:$8 sps:$4 sm:$0xff]   ;;  %v2447_v44 = vld [vmem:[#allocation5 + $0x150] ss:$8 sps:$4 sm:$0xff]  }
  0x37   :  { %2351 = vmatprep.subr.bf16.mxu1 %v2399_v8  ;;  %850 = vmatprep.subr.bf16.mxu0 %v2399_v8  ;;  %v2449_v42 = vld [vmem:[#allocation5 + $0x154] ss:$8 sps:$4 sm:$0xff]   ;;  %v2446_v43 = vld [vmem:[#allocation2 + $0x120] ss:$16 sps:$4 sm:$0xff]   ;;  %v2452_v47 = vld [vmem:[#allocation5 + $0x144] ss:$8 sps:$4 sm:$0xff]  }
  0x38   :  { %v2515_v45 = vld [vmem:[#allocation2 + $0x20] ss:$16 sps:$4 sm:$0xff]   ;;  %v2453_v46 = vld [vmem:[#allocation2 + $0x144] ss:$16 sps:$4 sm:$0xff]  }
  0x39   :  { %v2518_v48 = vld [vmem:[#allocation2 + $0x44] ss:$16 sps:$4 sm:$0xff]   ;;  %v2450_v49 = vld [vmem:[#allocation5 + $0x140] ss:$8 sps:$4 sm:$0xff]   ;;  %v2456_v52 = vld [vmem:[#allocation5 + $0x130] ss:$8 sps:$4 sm:$0xff]  }
  0x3a   :  { %2367 = vmatpush1.bf16.msra.mxu1 %v2401_v9  ;;  %851 = vmatpush1.bf16.msra.mxu0 %v2401_v9  ;;  %v2455_v50 = vld [vmem:[#allocation2 + $0x140] ss:$16 sps:$4 sm:$0xff]   ;;  %v2458_v51 = vld [vmem:[#allocation5 + $0x134] ss:$8 sps:$4 sm:$0xff]   ;;  %v2461_v54 = vld [vmem:[#allocation5 + $0x124] ss:$8 sps:$4 sm:$0xff]  }
  0x3b   :  { %2352 = vmatprep.subr.bf16.mxu1 %v2402_v10  ;;  %852 = vmatprep.subr.bf16.mxu0 %v2402_v10  ;;  %v2462_v53 = vld [vmem:[#allocation2 + $0x164] ss:$16 sps:$4 sm:$0xff]   ;;  %v2521_v55 = vld [vmem:[#allocation2 + $0x40] ss:$16 sps:$4 sm:$0xff]  }
  0x3c   :  { %v2524_v56 = vld [vmem:[#allocation2 + $0x64] ss:$16 sps:$4 sm:$0xff]   ;;  %v2459_v57 = vld [vmem:[#allocation5 + $0x120] ss:$8 sps:$4 sm:$0xff]   ;;  %v2465_v61 = vld [vmem:[#allocation5 + $0x110] ss:$8 sps:$4 sm:$0xff]  }
  0x3d   :  { %v2467_v58 = vld [vmem:[#allocation5 + $0x114] ss:$8 sps:$4 sm:$0xff]   ;;  %v2464_v59 = vld [vmem:[#allocation2 + $0x160] ss:$16 sps:$4 sm:$0xff]   ;;  %v2470_v63 = vld [vmem:[#allocation5 + $0x104] ss:$8 sps:$4 sm:$0xff]  }
  0x3e   :  { %2368 = vmatpush1.bf16.msra.mxu1 %v2404_v11  ;;  %853 = vmatpush1.bf16.msra.mxu0 %v2404_v11  ;;  %v2527_v60 = vld [vmem:[#allocation2 + $0x60] ss:$16 sps:$4 sm:$0xff]   ;;  %v2471_v62 = vld [vmem:[#allocation2 + $0x184] ss:$16 sps:$4 sm:$0xff]  }
  0x3f   :  { %2353 = vmatprep.subr.bf16.mxu1 %v2405_v12  ;;  %854 = vmatprep.subr.bf16.mxu0 %v2405_v12  ;;  %v2530_v0 = vld [vmem:[#allocation2 + $0x84] ss:$16 sps:$4 sm:$0xff]   ;;  %v2468_v1 = vld [vmem:[#allocation5 + $0x100] ss:$8 sps:$4 sm:$0xff]   ;;  %v2474_v5 = vld [vmem:[#allocation5 + $0x1f0] ss:$8 sps:$4 sm:$0xff]  }
  0x40   :  { %v2476_v2 = vld [vmem:[#allocation5 + $0x1f4] ss:$8 sps:$4 sm:$0xff]   ;;  %v2473_v3 = vld [vmem:[#allocation2 + $0x180] ss:$16 sps:$4 sm:$0xff]   ;;  %v2479_v7 = vld [vmem:[#allocation5 + $0x1e4] ss:$8 sps:$4 sm:$0xff]  }
  0x41   :  { %v2533_v4 = vld [vmem:[#allocation2 + $0x80] ss:$16 sps:$4 sm:$0xff]   ;;  %v2480_v6 = vld [vmem:[#allocation2 + $0x1a4] ss:$16 sps:$4 sm:$0xff]  }
  0x42   :  { %2369 = vmatpush1.bf16.msra.mxu1 %v2407_v14  ;;  %855 = vmatpush1.bf16.msra.mxu0 %v2407_v14  ;;  %v2536_v8 = vld [vmem:[#allocation2 + $0xa4] ss:$16 sps:$4 sm:$0xff]   ;;  %v2477_v9 = vld [vmem:[#allocation5 + $0x1e0] ss:$8 sps:$4 sm:$0xff]   ;;  %v2483_v13 = vld [vmem:[#allocation5 + $0x1d0] ss:$8 sps:$4 sm:$0xff]  }
  0x43   :  { %2354 = vmatprep.subr.bf16.mxu1 %v2408_v15  ;;  %856 = vmatprep.subr.bf16.mxu0 %v2408_v15  ;;  %v2485_v10 = vld [vmem:[#allocation5 + $0x1d4] ss:$8 sps:$4 sm:$0xff]   ;;  %v2482_v11 = vld [vmem:[#allocation2 + $0x1a0] ss:$16 sps:$4 sm:$0xff]   ;;  %v2488_v15 = vld [vmem:[#allocation5 + $0x1c4] ss:$8 sps:$4 sm:$0xff]  }
  0x44   :  { %v2539_v12 = vld [vmem:[#allocation2 + $0xa0] ss:$16 sps:$4 sm:$0xff]   ;;  %v2489_v14 = vld [vmem:[#allocation2 + $0x1c4] ss:$16 sps:$4 sm:$0xff]  }
  0x45   :  { %v2504_v29 = vld [vmem:[#allocation5 + $0x190] ss:$8 sps:$4 sm:$0xff]  }
  0x46   :  { %2370 = vmatpush1.bf16.msra.mxu1 %v2410_v16  ;;  %857 = vmatpush1.bf16.msra.mxu0 %v2410_v16  ;;  %v2542_v16 = vld [vmem:[#allocation2 + $0xc4] ss:$16 sps:$4 sm:$0xff]  }
  0x47   :  { %2355 = vmatprep.subr.bf16.mxu1 %v2411_v17  ;;  %858 = vmatprep.subr.bf16.mxu0 %v2411_v17  ;;  %v2486_v17 = vld [vmem:[#allocation5 + $0x1c0] ss:$8 sps:$4 sm:$0xff]  }
  0x4a   :  { %2371 = vmatpush2.bf16.msra.mxu1 %v2413_v18  ;;  %859 = vmatpush2.bf16.msra.mxu0 %v2413_v18  ;;  %v2494_v18 = vld [vmem:[#allocation5 + $0x1b4] ss:$8 sps:$4 sm:$0xff]  }
  0x4b   :  { %2356 = vmatprep.subr.bf16.mxu1 %v2414_v19  ;;  %860 = vmatprep.subr.bf16.mxu0 %v2414_v19  ;;  %v2491_v19 = vld [vmem:[#allocation2 + $0x1c0] ss:$16 sps:$4 sm:$0xff]  }
  0x4e   :  { %2372 = vmatpush2.bf16.msra.mxu1 %v2416_v20  ;;  %861 = vmatpush2.bf16.msra.mxu0 %v2416_v20  ;;  %v2545_v20 = vld [vmem:[#allocation2 + $0xc0] ss:$16 sps:$4 sm:$0xff]  }
  0x4f   :  { %2357 = vmatprep.subr.bf16.mxu1 %v2417_v21  ;;  %862 = vmatprep.subr.bf16.mxu0 %v2417_v21  ;;  %v2492_v21 = vld [vmem:[#allocation5 + $0x1b0] ss:$8 sps:$4 sm:$0xff]  }
  0x52   :  { %2373 = vmatpush2.bf16.msra.mxu1 %v2419_v22  ;;  %863 = vmatpush2.bf16.msra.mxu0 %v2419_v22  ;;  %v2498_v22 = vld [vmem:[#allocation2 + $0x1e4] ss:$16 sps:$4 sm:$0xff]  }
  0x53   :  { %2358 = vmatprep.subr.bf16.mxu1 %v2420_v23  ;;  %864 = vmatprep.subr.bf16.mxu0 %v2420_v23  ;;  %v2497_v23 = vld [vmem:[#allocation5 + $0x1a4] ss:$8 sps:$4 sm:$0xff]  }
  0x56   :  { %2374 = vmatpush2.bf16.msra.mxu1 %v2422_v24  ;;  %865 = vmatpush2.bf16.msra.mxu0 %v2422_v24  ;;  %v2548_v24 = vld [vmem:[#allocation2 + $0xe4] ss:$16 sps:$4 sm:$0xff]  }
  0x57   :  { %2359 = vmatprep.subr.bf16.mxu1 %v2423_v25  ;;  %866 = vmatprep.subr.bf16.mxu0 %v2423_v25  ;;  %v2495_v25 = vld [vmem:[#allocation5 + $0x1a0] ss:$8 sps:$4 sm:$0xff]  }
  0x5a   :  { %2375 = vmatpush2.bf16.msra.mxu1 %v2425_v26  ;;  %867 = vmatpush2.bf16.msra.mxu0 %v2425_v26  ;;  %v2506_v26 = vld [vmem:[#allocation5 + $0x194] ss:$8 sps:$4 sm:$0xff]  }
  0x5b   :  { %2360 = vmatprep.subr.bf16.mxu1 %v2426_v27  ;;  %868 = vmatprep.subr.bf16.mxu0 %v2426_v27  ;;  %v2503_v27 = vld [vmem:[#allocation2 + $0x1e0] ss:$16 sps:$4 sm:$0xff]  }
  0x5e   :  { %2376 = vmatpush2.bf16.msra.mxu1 %v2428_v28  ;;  %869 = vmatpush2.bf16.msra.mxu0 %v2428_v28  ;;  %v2551_v28 = vld [vmem:[#allocation2 + $0xe0] ss:$16 sps:$4 sm:$0xff]  }
  0x5f   :  { %2361 = vmatprep.subr.bf16.mxu1 %v2429_v30  ;;  %870 = vmatprep.subr.bf16.mxu0 %v2429_v30  ;;  %v2512_v30 = vld [vmem:[#allocation2 + $0xc] ss:$16 sps:$4 sm:$0xff]  }
  0x62   :  { %2377 = vmatpush2.bf16.msra.mxu1 %v2431_v31  ;;  %871 = vmatpush2.bf16.msra.mxu0 %v2431_v31  ;;  %v2509_v31 = vld [vmem:[#allocation5 + $0x184] ss:$8 sps:$4 sm:$0xff]  }
  0x63   :  { %2362 = vmatprep.subr.bf16.mxu1 %v2432_v32  ;;  %872 = vmatprep.subr.bf16.mxu0 %v2432_v32  ;;  %v2507_v32 = vld [vmem:[#allocation5 + $0x180] ss:$8 sps:$4 sm:$0xff]  }
  0x66   :  { %2378 = vmatpush2.bf16.msra.mxu1 %v2434_v33  ;;  %873 = vmatpush2.bf16.msra.mxu0 %v2434_v33  ;;  %v2510_v33 = vld [vmem:[#allocation2 + $0x8] ss:$16 sps:$4 sm:$0xff]  }
  0x67   :  { %1035 = vmatprep.subr.bf16.mxu1 %v2440_v34  ;;  %v2516_v34 = vld [vmem:[#allocation2 + $0x2c] ss:$16 sps:$4 sm:$0xff]  }
  0x69   :  { %955 = vmatmul.mubr.bf16.vlgmr.msra.gmra.mxu1 %v2435_v35  ;;  %875 = vmatmul.mubr.bf16.vlgmr.msra.gmra.mxu0 %v2500_v37  ;;  %v2520_v35 = vld [vmem:[#allocation2 + $0x28] ss:$16 sps:$4 sm:$0xff]  }
  0x6a   :  { %1036 = vmatpush1.bf16.msra.mxu1 %v2438_v36  ;;  %964 = vmatprep.mubr.bf16.mxu1 %v2444_v38  ;;  %v2522_v36 = vld [vmem:[#allocation2 + $0x4c] ss:$16 sps:$4 sm:$0xff]   ;;  %v2526_v37 = vld [vmem:[#allocation2 + $0x48] ss:$16 sps:$4 sm:$0xff]  }
  0x6b   :  { %1037 = vmatprep.subr.bf16.mxu1 %v2443_v39  ;;  %884 = vmatprep.mubr.bf16.mxu0 %v2513_v40  ;;  %v2528_v38 = vld [vmem:[#allocation2 + $0x6c] ss:$16 sps:$4 sm:$0xff]   ;;  %v2579_v40 = vld [vmem:[#allocation7 + $0x70] ss:$8 sps:$4 sm:$0xff]  }
  0x6c   :  { %v2581_v39 = vld [vmem:[#allocation7 + $0x74] ss:$8 sps:$4 sm:$0xff]  }
  0x6d   :  { %1592 = vmatprep.subr.bf16.mxu0 %v2581_v39 }
  0x6e   :  { %1038 = vmatpush1.bf16.msra.mxu1 %v2441_v41  ;;  %1593 = vmatpush1.bf16.msra.mxu0 %v2579_v40  ;;  %v2584_v41 = vld [vmem:[#allocation7 + $0x64] ss:$8 sps:$4 sm:$0xff]  }
  0x6f   :  { %1039 = vmatprep.subr.bf16.mxu1 %v2449_v42  ;;  %v2582_v42 = vld [vmem:[#allocation7 + $0x60] ss:$8 sps:$4 sm:$0xff]   ;;  %1594 = vmatprep.subr.bf16.mxu0 %v2584_v41 }
  0x71   :  { %965 = vmatmul.mubr.bf16.gmra.mxu1 %v2446_v43  ;;  %885 = vmatmul.mubr.bf16.gmra.mxu0 %v2515_v45  ;;  %v2532_v43 = vld [vmem:[#allocation2 + $0x68] ss:$16 sps:$4 sm:$0xff]   ;;  %v2587_v45 = vld [vmem:[#allocation7 + $0x54] ss:$8 sps:$4 sm:$0xff]  }
  0x72   :  { %1040 = vmatpush1.bf16.msra.mxu1 %v2447_v44  ;;  %974 = vmatprep.mubr.bf16.mxu1 %v2453_v46  ;;  %v2534_v44 = vld [vmem:[#allocation2 + $0x8c] ss:$16 sps:$4 sm:$0xff]   ;;  %v2585_v46 = vld [vmem:[#allocation7 + $0x50] ss:$8 sps:$4 sm:$0xff]  }
  0x73   :  { %1041 = vmatprep.subr.bf16.mxu1 %v2452_v47  ;;  %894 = vmatprep.mubr.bf16.mxu0 %v2518_v48  ;;  %v2590_v47 = vld [vmem:[#allocation7 + $0x44] ss:$8 sps:$4 sm:$0xff]   ;;  %v2588_v48 = vld [vmem:[#allocation7 + $0x40] ss:$8 sps:$4 sm:$0xff]  }
  0x74   :  { %1595 = vmatpush1.bf16.msra.mxu0 %v2582_v42 }
  0x75   :  { %1596 = vmatprep.subr.bf16.mxu0 %v2587_v45 }
  0x76   :  { %1042 = vmatpush1.bf16.msra.mxu1 %v2450_v49  ;;  %v2538_v49 = vld [vmem:[#allocation2 + $0x88] ss:$16 sps:$4 sm:$0xff]  }
  0x77   :  { %1043 = vmatprep.subr.bf16.mxu1 %v2458_v51  ;;  %v2593_v51 = vld [vmem:[#allocation7 + $0x34] ss:$8 sps:$4 sm:$0xff]  }
  0x78   :  { %1597 = vmatpush1.bf16.msra.mxu0 %v2585_v46 }
  0x79   :  { %975 = vmatmul.mubr.bf16.gmra.mxu1 %v2455_v50  ;;  %895 = vmatmul.mubr.bf16.gmra.mxu0 %v2521_v55  ;;  %v2540_v50 = vld [vmem:[#allocation2 + $0xac] ss:$16 sps:$4 sm:$0xff]   ;;  %v2544_v55 = vld [vmem:[#allocation2 + $0xa8] ss:$16 sps:$4 sm:$0xff]  }
  0x7a   :  { %1044 = vmatpush1.bf16.msra.mxu1 %v2456_v52  ;;  %984 = vmatprep.mubr.bf16.mxu1 %v2462_v53  ;;  %v2591_v52 = vld [vmem:[#allocation7 + $0x30] ss:$8 sps:$4 sm:$0xff]   ;;  %v2596_v53 = vld [vmem:[#allocation7 + $0x24] ss:$8 sps:$4 sm:$0xff]  }
  0x7b   :  { %1045 = vmatprep.subr.bf16.mxu1 %v2461_v54  ;;  %904 = vmatprep.mubr.bf16.mxu0 %v2524_v56  ;;  %v2594_v54 = vld [vmem:[#allocation7 + $0x20] ss:$8 sps:$4 sm:$0xff]   ;;  %v2546_v56 = vld [vmem:[#allocation2 + $0xcc] ss:$16 sps:$4 sm:$0xff]  }
  0x7c   :  { %1598 = vmatprep.subr.bf16.mxu0 %v2590_v47 }
  0x7d   :  { %1599 = vmatpush1.bf16.msra.mxu0 %v2588_v48 }
  0x7e   :  { %1046 = vmatpush1.bf16.msra.mxu1 %v2459_v57  ;;  %1600 = vmatprep.subr.bf16.mxu0 %v2593_v51  ;;  %v2599_v57 = vld [vmem:[#allocation7 + $0x14] ss:$8 sps:$4 sm:$0xff]  }
  0x7f   :  { %1047 = vmatprep.subr.bf16.mxu1 %v2467_v58  ;;  %v2597_v58 = vld [vmem:[#allocation7 + $0x10] ss:$8 sps:$4 sm:$0xff]  }
  0x81   :  { %985 = vmatmul.mubr.bf16.gmra.mxu1 %v2464_v59  ;;  %905 = vmatmul.mubr.bf16.gmra.mxu0 %v2527_v60  ;;  %v2602_v59 = vld [vmem:[#allocation7 + $0x4] ss:$8 sps:$4 sm:$0xff]   ;;  %v2600_v60 = vld [vmem:[#allocation7] ss:$8 sps:$4 sm:$0xff]  }
  0x82   :  { %1048 = vmatpush1.bf16.msra.mxu1 %v2465_v61  ;;  %994 = vmatprep.mubr.bf16.mxu1 %v2471_v62  ;;  %v2550_v61 = vld [vmem:[#allocation2 + $0xc8] ss:$16 sps:$4 sm:$0xff]   ;;  %v2552_v62 = vld [vmem:[#allocation2 + $0xec] ss:$16 sps:$4 sm:$0xff]  }
  0x83   :  { %1049 = vmatprep.subr.bf16.mxu1 %v2470_v63  ;;  %914 = vmatprep.mubr.bf16.mxu0 %v2530_v0  ;;  %v2605_v63 = vld [vmem:[#allocation7 + $0xf4] ss:$8 sps:$4 sm:$0xff]   ;;  %v2603_v0 = vld [vmem:[#allocation7 + $0xf0] ss:$8 sps:$4 sm:$0xff]  }
  0x84   :  { %1601 = vmatpush1.bf16.msra.mxu0 %v2591_v52 }
  0x85   :  { %1602 = vmatprep.subr.bf16.mxu0 %v2596_v53 }
  0x86   :  { %1050 = vmatpush1.bf16.msra.mxu1 %v2468_v1  ;;  %v2608_v1 = vld [vmem:[#allocation7 + $0xe4] ss:$8 sps:$4 sm:$0xff]  }
  0x87   :  { %1051 = vmatprep.subr.bf16.mxu1 %v2476_v2  ;;  %v2606_v2 = vld [vmem:[#allocation7 + $0xe0] ss:$8 sps:$4 sm:$0xff]  }
  0x88   :  { %1603 = vmatpush1.bf16.msra.mxu0 %v2594_v54 }
  0x89   :  { %995 = vmatmul.mubr.bf16.gmra.mxu1 %v2473_v3  ;;  %915 = vmatmul.mubr.bf16.gmra.mxu0 %v2533_v4  ;;  %v2554_v3 = vld [vmem:[#allocation2 + $0xe8] ss:$16 sps:$4 sm:$0xff]   ;;  %v2555_v4 = vld [vmem:[#allocation2 + $0x10c] ss:$16 sps:$4 sm:$0xff]  }
  0x8a   :  { %1052 = vmatpush2.bf16.msra.mxu1 %v2474_v5  ;;  %1004 = vmatprep.mubr.bf16.mxu1 %v2480_v6  ;;  %v2611_v5 = vld [vmem:[#allocation7 + $0xd4] ss:$8 sps:$4 sm:$0xff]   ;;  %v2609_v6 = vld [vmem:[#allocation7 + $0xd0] ss:$8 sps:$4 sm:$0xff]  }
  0x8b   :  { %1053 = vmatprep.subr.bf16.mxu1 %v2479_v7  ;;  %924 = vmatprep.mubr.bf16.mxu0 %v2536_v8  ;;  %v2614_v7 = vld [vmem:[#allocation7 + $0xc4] ss:$8 sps:$4 sm:$0xff]   ;;  %v2612_v8 = vld [vmem:[#allocation7 + $0xc0] ss:$8 sps:$4 sm:$0xff]  }
  0x8c   :  { %1604 = vmatprep.subr.bf16.mxu0 %v2599_v57 }
  0x8d   :  { %1605 = vmatpush1.bf16.msra.mxu0 %v2597_v58 }
  0x8e   :  { %1054 = vmatpush2.bf16.msra.mxu1 %v2477_v9  ;;  %1606 = vmatprep.subr.bf16.mxu0 %v2602_v59  ;;  %v2557_v9 = vld [vmem:[#allocation2 + $0x108] ss:$16 sps:$4 sm:$0xff]  }
  0x8f   :  { %1055 = vmatprep.subr.bf16.mxu1 %v2485_v10  ;;  %v2558_v10 = vld [vmem:[#allocation2 + $0x12c] ss:$16 sps:$4 sm:$0xff]  }
  0x91   :  { %1005 = vmatmul.mubr.bf16.gmra.mxu1 %v2482_v11  ;;  %925 = vmatmul.mubr.bf16.gmra.mxu0 %v2539_v12  ;;  %v2617_v11 = vld [vmem:[#allocation7 + $0xb4] ss:$8 sps:$4 sm:$0xff]   ;;  %v2615_v12 = vld [vmem:[#allocation7 + $0xb0] ss:$8 sps:$4 sm:$0xff]  }
  0x92   :  { %1056 = vmatpush2.bf16.msra.mxu1 %v2483_v13  ;;  %1014 = vmatprep.mubr.bf16.mxu1 %v2489_v14  ;;  %v2620_v13 = vld [vmem:[#allocation7 + $0xa4] ss:$8 sps:$4 sm:$0xff]   ;;  %v2618_v14 = vld [vmem:[#allocation7 + $0xa0] ss:$8 sps:$4 sm:$0xff]  }
  0x93   :  { %1057 = vmatprep.subr.bf16.mxu1 %v2488_v15  ;;  %934 = vmatprep.mubr.bf16.mxu0 %v2542_v16  ;;  %v2560_v15 = vld [vmem:[#allocation2 + $0x128] ss:$16 sps:$4 sm:$0xff]   ;;  %v2561_v16 = vld [vmem:[#allocation2 + $0x14c] ss:$16 sps:$4 sm:$0xff]  }
  0x94   :  { %1607 = vmatpush1.bf16.msra.mxu0 %v2600_v60 }
  0x95   :  { %1608 = vmatprep.subr.bf16.mxu0 %v2605_v63 }
  0x96   :  { %1058 = vmatpush2.bf16.msra.mxu1 %v2486_v17  ;;  %v2623_v17 = vld [vmem:[#allocation7 + $0x94] ss:$8 sps:$4 sm:$0xff]  }
  0x97   :  { %1059 = vmatprep.subr.bf16.mxu1 %v2494_v18  ;;  %v2621_v18 = vld [vmem:[#allocation7 + $0x90] ss:$8 sps:$4 sm:$0xff]  }
  0x98   :  { %1609 = vmatpush2.bf16.msra.mxu0 %v2603_v0 }
  0x99   :  { %1015 = vmatmul.mubr.bf16.gmra.mxu1 %v2491_v19  ;;  %935 = vmatmul.mubr.bf16.gmra.mxu0 %v2545_v20  ;;  %v2626_v19 = vld [vmem:[#allocation7 + $0x84] ss:$8 sps:$4 sm:$0xff]   ;;  %v2624_v20 = vld [vmem:[#allocation7 + $0x80] ss:$8 sps:$4 sm:$0xff]  }
  0x9a   :  { %1060 = vmatpush2.bf16.msra.mxu1 %v2492_v21  ;;  %1024 = vmatprep.mubr.bf16.mxu1 %v2498_v22  ;;  %v2563_v21 = vld [vmem:[#allocation2 + $0x148] ss:$16 sps:$4 sm:$0xff]   ;;  %v2564_v22 = vld [vmem:[#allocation2 + $0x16c] ss:$16 sps:$4 sm:$0xff]  }
  0x9b   :  { %1061 = vmatprep.subr.bf16.mxu1 %v2497_v23  ;;  %944 = vmatprep.mubr.bf16.mxu0 %v2548_v24  ;;  %v2566_v23 = vld [vmem:[#allocation2 + $0x168] ss:$16 sps:$4 sm:$0xff]   ;;  %v2567_v24 = vld [vmem:[#allocation2 + $0x18c] ss:$16 sps:$4 sm:$0xff]  }
  0x9c   :  { %1610 = vmatprep.subr.bf16.mxu0 %v2608_v1 }
  0x9d   :  { %1611 = vmatpush2.bf16.msra.mxu0 %v2606_v2 }
  0x9e   :  { %1062 = vmatpush2.bf16.msra.mxu1 %v2495_v25  ;;  %1612 = vmatprep.subr.bf16.mxu0 %v2611_v5  ;;  %v2569_v25 = vld [vmem:[#allocation2 + $0x188] ss:$16 sps:$4 sm:$0xff]  }
  0x9f   :  { %1063 = vmatprep.subr.bf16.mxu1 %v2506_v26  ;;  %v2570_v26 = vld [vmem:[#allocation2 + $0x1ac] ss:$16 sps:$4 sm:$0xff]  }
  0xa1   :  { %1025 = vmatmul.mubr.bf16.gmra.mxu1 %v2503_v27  ;;  %945 = vmatmul.mubr.bf16.gmra.mxu0 %v2551_v28  ;;  %v2572_v27 = vld [vmem:[#allocation2 + $0x1a8] ss:$16 sps:$4 sm:$0xff]   ;;  %v2573_v28 = vld [vmem:[#allocation2 + $0x1cc] ss:$16 sps:$4 sm:$0xff]  }
  0xa2   :  { %1064 = vmatpush2.bf16.msra.mxu1 %v2504_v29  ;;  %1067 = vmatprep.mubr.bf16.mxu1 %v2512_v30  ;;  %v2575_v29 = vld [vmem:[#allocation2 + $0x1c8] ss:$16 sps:$4 sm:$0xff]   ;;  %v2576_v30 = vld [vmem:[#allocation2 + $0x1ec] ss:$16 sps:$4 sm:$0xff]  }
  0xa3   :  { %1065 = vmatprep.subr.bf16.mxu1 %v2509_v31  ;;  %1613 = vmatpush2.bf16.msra.mxu0 %v2609_v6  ;;  %v192_v31 = vlaneseq }
  0xa4   :  { %1614 = vmatprep.subr.bf16.mxu0 %v2614_v7 }
  0xa6   :  { %1066 = vmatpush2.bf16.msra.mxu1 %v2507_v32  ;;  %v2578_v32 = vld [vmem:[#allocation2 + $0x1e8] ss:$16 sps:$4 sm:$0xff]  }
  0xa7   :  { %1615 = vmatpush2.bf16.msra.mxu0 %v2612_v8 }
  0xa8   :  { %1616 = vmatprep.subr.bf16.mxu0 %v2617_v11 }
  0xa9   :  { %1068 = vmatmul.mubr.bf16.vlgmr.msra.gmra.mxu1 %v2510_v33  ;;  %v3019_v33 = vshrl.u32 %v192_v31, 7 }
  0xaa   :  { %1077 = vmatprep.mubr.bf16.mxu1 %v2516_v34 }
  0xab   :  { %1617 = vmatpush2.bf16.msra.mxu0 %v2615_v12  ;;  %3354 = vst [vmem:[#allocation12_spill] sm:$0xff] %v3019_v33  ;;  %v3351_v34 = vsub.s32 0, %v3019_v33 }
  0xac   :  { %1618 = vmatprep.subr.bf16.mxu0 %v2620_v13 }
  0xaf   :  { %1619 = vmatpush2.bf16.msra.mxu0 %v2618_v14 }
  0xb0   :  { %1620 = vmatprep.subr.bf16.mxu0 %v2623_v17 }
  0xb1   :  { %1078 = vmatmul.mubr.bf16.gmra.mxu1 %v2520_v35  ;;  %v190_v35 = vld [vmem:[%s3346_s2] sm:$0x3] }
  0xb2   :  { %1087 = vmatprep.mubr.bf16.mxu1 %v2522_v36  ;;  %v3350_v36 = vsub.s32 1, %v3019_v33 }
  0xb3   :  { %1621 = vmatpush2.bf16.msra.mxu0 %v2621_v18 }
  0xb4   :  { %1622 = vmatprep.subr.bf16.mxu0 %v2626_v19 }
  0xb7   :  { %1623 = vmatpush2.bf16.msra.mxu0 %v2624_v20 }
  0xb9   :  { %1088 = vmatmul.mubr.bf16.gmra.mxu1 %v2526_v37  ;;  %v3028_v37 = vrot.slane %v190_v35, %v3351_v34 }
  0xba   :  { %1097 = vmatprep.mubr.bf16.mxu1 %v2528_v38  ;;  %v3032_v38 = vrot.slane %v190_v35, %v3350_v36 }
  0xc1   :  { %1098 = vmatmul.mubr.bf16.gmra.mxu1 %v2532_v43 }
  0xc2   :  { %1107 = vmatprep.mubr.bf16.mxu1 %v2534_v44 }
  0xc9   :  { %1108 = vmatmul.mubr.bf16.gmra.mxu1 %v2538_v49 }
  0xca   :  { %1117 = vmatprep.mubr.bf16.mxu1 %v2540_v50 }
  0xd1   :  { %1118 = vmatmul.mubr.bf16.gmra.mxu1 %v2544_v55 }
  0xd2   :  { %1127 = vmatprep.mubr.bf16.mxu1 %v2546_v56 }
  0xd9   :  { %1128 = vmatmul.mubr.bf16.gmra.mxu1 %v2550_v61 }
  0xda   :  { %1137 = vmatprep.mubr.bf16.mxu1 %v2552_v62 }
  0xe1   :  { %1138 = vmatmul.mubr.bf16.gmra.mxu1 %v2554_v3 }
  0xe2   :  { %1147 = vmatprep.mubr.bf16.mxu1 %v2555_v4 }
  0xe9   :  { %1148 = vmatmul.mubr.bf16.gmra.mxu1 %v2557_v9 }
  0xea   :  { %1157 = vmatprep.mubr.bf16.mxu1 %v2558_v10 }
  0xf1   :  { %1158 = vmatmul.mubr.bf16.gmra.mxu1 %v2560_v15 }
  0xf2   :  { %1167 = vmatprep.mubr.bf16.mxu1 %v2561_v16 }
  0xf9   :  { %1168 = vmatmul.mubr.bf16.gmra.mxu1 %v2563_v21 }
  0xfa   :  { %1177 = vmatprep.mubr.bf16.mxu1 %v2564_v22 }
 0x101   :  { %1178 = vmatmul.mubr.bf16.gmra.mxu1 %v2566_v23 }
 0x102   :  { %1187 = vmatprep.mubr.bf16.mxu1 %v2567_v24 }
 0x109   :  { %1188 = vmatmul.mubr.bf16.gmra.mxu1 %v2569_v25 }
 0x10a   :  { %1197 = vmatprep.mubr.bf16.mxu1 %v2570_v26 }
 0x111   :  { %1198 = vmatmul.mubr.bf16.gmra.mxu1 %v2572_v27 }
 0x112   :  { %1207 = vmatprep.mubr.bf16.mxu1 %v2573_v28 }
 0x119   :  { %1208 = vmatmul.mubr.bf16.gmra.mxu1 %v2575_v29 }
 0x11a   :  { %1217 = vmatprep.mubr.bf16.mxu1 %v2576_v30 }
 0x121   :  { %1218 = vmatmul.mubr.bf16.gmra.mxu1 %v2578_v32 }
 0x129   :  { %v956_v39 = vpop.f32.mrf.mxu1  ;;  %v3034_v40 = vpop.f32.mrf.mxu0 }
 0x12a   :  { %v3037_v41 = vadd.f32 %v956_v39, %v3028_v37 }
 0x12b   :  { %v958_v42 = vpop.f32.mrf.mxu1  ;;  %v3039_v43 = vpop.f32.mrf.mxu0 }
 0x12c   :  { %v3042_v44 = vadd.f32 %v958_v42, %v3032_v38 }
 0x12d   :  { %v960_v45 = vpop.f32.mrf.mxu1  ;;  %v3047_v48 = vpop.f32.mrf.mxu0 }
 0x12e   :  { %v3045_v46 = vadd.f32 %v960_v45, %v3028_v37 }
 0x12f   :  { %v962_v47 = vpop.f32.mrf.mxu1  ;;  %v3055_v53 = vpop.f32.mrf.mxu0 }
 0x130   :  { %v3050_v49 = vadd.f32 %v962_v47, %v3032_v38 }
 0x131   :  { %v966_v50 = vpop.f32.mrf.mxu1  ;;  %v3063_v58 = vpop.f32.mrf.mxu0 }
 0x132   :  { %v3053_v51 = vadd.f32 %v966_v50, %v3028_v37 }
 0x133   :  { %v968_v52 = vpop.f32.mrf.mxu1  ;;  %v3071_v63 = vpop.f32.mrf.mxu0 }
 0x134   :  { %v3058_v54 = vadd.f32 %v968_v52, %v3032_v38 }
 0x135   :  { %v970_v55 = vpop.f32.mrf.mxu1  ;;  %v3079_v4 = vpop.f32.mrf.mxu0 }
 0x136   :  { %v3061_v56 = vadd.f32 %v970_v55, %v3028_v37 }
 0x137   :  { %v972_v57 = vpop.f32.mrf.mxu1  ;;  %v3087_v9 = vpop.f32.mrf.mxu0 }
 0x138   :  { %v3066_v59 = vadd.f32 %v972_v57, %v3032_v38 }
 0x139   :  { %v976_v60 = vpop.f32.mrf.mxu1  ;;  %v3095_v14 = vpop.f32.mrf.mxu0 }
 0x13a   :  { %v3069_v61 = vadd.f32 %v976_v60, %v3028_v37 }
 0x13b   :  { %v978_v62 = vpop.f32.mrf.mxu1  ;;  %v3103_v19 = vpop.f32.mrf.mxu0 }
 0x13c   :  { %v3074_v0 = vadd.f32 %v978_v62, %v3032_v38 }
 0x13d   :  { %v980_v1 = vpop.f32.mrf.mxu1  ;;  %v3111_v24 = vpop.f32.mrf.mxu0 }
 0x13e   :  { %v3077_v2 = vadd.f32 %v980_v1, %v3028_v37 }
 0x13f   :  { %v982_v3 = vpop.f32.mrf.mxu1  ;;  %v3119_v29 = vpop.f32.mrf.mxu0 }
 0x140   :  { %v3082_v5 = vadd.f32 %v982_v3, %v3032_v38 }
 0x141   :  { %v986_v6 = vpop.f32.mrf.mxu1  ;;  %v3127_v39 = vpop.f32.mrf.mxu0 }
 0x142   :  { %v3085_v7 = vadd.f32 %v986_v6, %v3028_v37 }
 0x143   :  { %v988_v8 = vpop.f32.mrf.mxu1  ;;  %v3135_v52 = vpop.f32.mrf.mxu0 }
 0x144   :  { %v3090_v10 = vadd.f32 %v988_v8, %v3032_v38 }
 0x145   :  { %v990_v11 = vpop.f32.mrf.mxu1  ;;  %v3143_v1 = vpop.f32.mrf.mxu0 }
 0x146   :  { %v3093_v12 = vadd.f32 %v990_v11, %v3028_v37 }
 0x147   :  { %v992_v13 = vpop.f32.mrf.mxu1 }
 0x148   :  { %v3098_v15 = vadd.f32 %v992_v13, %v3032_v38  ;;  %v3151_v13 = vpop.f32.mrf.mxu0 }
 0x149   :  { %v996_v16 = vpop.f32.mrf.mxu1 }
 0x14a   :  { %v3101_v17 = vadd.f32 %v996_v16, %v3028_v37 }
 0x14b   :  { %v998_v18 = vpop.f32.mrf.mxu1 }
 0x14c   :  { %v3106_v20 = vadd.f32 %v998_v18, %v3032_v38 }
 0x14d   :  { %v1000_v21 = vpop.f32.mrf.mxu1 }
 0x14e   :  { %v3109_v22 = vadd.f32 %v1000_v21, %v3028_v37 }
 0x14f   :  { %v1002_v23 = vpop.f32.mrf.mxu1 }
 0x150   :  { %v3114_v25 = vadd.f32 %v1002_v23, %v3032_v38 }
 0x151   :  { %v1006_v26 = vpop.f32.mrf.mxu1 }
 0x152   :  { %v3117_v27 = vadd.f32 %v1006_v26, %v3028_v37  ;;  %v3159_v26 = vpop.f32.mrf.mxu0 }
 0x153   :  { %v1008_v28 = vpop.f32.mrf.mxu1 }
 0x154   :  { %v3122_v30 = vadd.f32 %v1008_v28, %v3032_v38 }
 0x155   :  { %v1010_v31 = vpop.f32.mrf.mxu1 }
 0x156   :  { %v3125_v32 = vadd.f32 %v1010_v31, %v3028_v37  ;;  %v877_v31 = vadd.f32 %v3034_v40, %v3028_v37 }
 0x157   :  { %v1012_v35 = vpop.f32.mrf.mxu1 }
 0x158   :  { %3355 = vst [vmem:[#allocation13_spill] sm:$0xff] %v3125_v32  ;;  %v3130_v42 = vadd.f32 %v1012_v35, %v3032_v38 }
 0x159   :  { %v1016_v45 = vpop.f32.mrf.mxu1 }
 0x15a   :  { %3356 = vst [vmem:[#allocation14_spill] sm:$0xff] %v3130_v42  ;;  %v3133_v47 = vadd.f32 %v1016_v45, %v3028_v37  ;;  %v879_v45 = vadd.f32 %v3039_v43, %v3032_v38 }
 0x15b   :  { %v1018_v50 = vpop.f32.mrf.mxu1 }
 0x15c   :  { %3357 = vst [vmem:[#allocation15_spill] sm:$0xff] %v3133_v47  ;;  %v3138_v55 = vadd.f32 %v1018_v50, %v3032_v38 }
 0x15d   :  { %v1020_v57 = vpop.f32.mrf.mxu1 }
 0x15e   :  { %3358 = vst [vmem:[#allocation16_spill] sm:$0xff] %v3138_v55  ;;  %v3141_v60 = vadd.f32 %v1020_v57, %v3028_v37  ;;  %v3168_v57 = vpop.f32.mrf.mxu0 }
 0x15f   :  { %v1022_v62 = vpop.f32.mrf.mxu1 }
 0x160   :  { %3359 = vst [vmem:[#allocation17_spill] sm:$0xff] %v3141_v60  ;;  %v3146_v3 = vadd.f32 %v1022_v62, %v3032_v38  ;;  %v881_v62 = vadd.f32 %v3047_v48, %v3028_v37  ;;  %v3174_v33 = vpop.f32.mrf.mxu0  ;;  %v889_v48 = vadd.f32 %v3071_v63, %v3032_v38 }
 0x161   :  { %v1026_v6 = vpop.f32.mrf.mxu1 }
 0x162   :  { %3360 = vst [vmem:[#allocation18_spill] sm:$0xff] %v3146_v3  ;;  %v3149_v8 = vadd.f32 %v1026_v6, %v3028_v37 }
 0x163   :  { %v1028_v11 = vpop.f32.mrf.mxu1 }
 0x164   :  { %3361 = vst [vmem:[#allocation19_spill] sm:$0xff] %v3149_v8  ;;  %v3154_v16 = vadd.f32 %v1028_v11, %v3032_v38 }
 0x165   :  { %v1030_v18 = vpop.f32.mrf.mxu1 }
 0x166   :  { %3362 = vst [vmem:[#allocation20_spill] sm:$0xff] %v3154_v16  ;;  %v3157_v21 = vadd.f32 %v1030_v18, %v3028_v37  ;;  %v887_v16 = vadd.f32 %v3063_v58, %v3028_v37  ;;  %v893_v58 = vadd.f32 %v3087_v9, %v3032_v38 }
 0x167   :  { %v1032_v23 = vpop.f32.mrf.mxu1 }
 0x168   :  { %3363 = vst [vmem:[#allocation21_spill] sm:$0xff] %v3157_v21  ;;  %v3162_v28 = vadd.f32 %v1032_v23, %v3032_v38  ;;  %v883_v23 = vadd.f32 %v3055_v53, %v3032_v38 }
 0x169   :  { %v1069_v35 = vpop.f32.mrf.mxu1 }
 0x16a   :  { %3364 = vst [vmem:[#allocation22_spill] sm:$0xff] %v3162_v28  ;;  %v1070_v11 = vadd.f32 %v1069_v35, %v877_v31 }
 0x16b   :  { %v1071_v50 = vpop.f32.mrf.mxu1 }
 0x16c   :  { %v1072_v6 = vadd.f32 %v1071_v50, %v879_v45  ;;  %v1228_v43 = vmul.f32 0.1, %v1070_v11  ;;  %v3180_v50 = vpop.f32.mrf.mxu0 }
 0x16d   :  { %v1073_v18 = vpop.f32.mrf.mxu1 }
 0x16e   :  { %v1074_v36 = vadd.f32 %v1073_v18, %v881_v62  ;;  %v1229_v40 = vmul.f32 0.1, %v1072_v6  ;;  %v891_v62 = vadd.f32 %v3079_v4, %v3028_v37  ;;  %v897_v4 = vadd.f32 %v3095_v14, %v3028_v37 }
 0x16f   :  { %v1075_v34 = vpop.f32.mrf.mxu1  ;;  %v903_v14 = vadd.f32 %v3119_v29, %v3032_v38 }
 0x170   :  { %v1230_v28 = vmul.f32 0.1, %v1074_v36  ;;  %v1076_v21 = vadd.f32 %v1075_v34, %v883_v23  ;;  %v1293_v53 = vmax.f32 %v1072_v6, %v1229_v40  ;;  %v1292_v34 = vmax.f32 %v1070_v11, %v1228_v43 }
 0x171   :  { %v1079_v8 = vpop.f32.mrf.mxu1 }
 0x172   :  { %v1231_v31 = vmul.f32 0.1, %v1076_v21  ;;  %v1294_v35 = vmax.f32 %v1074_v36, %v1230_v28  ;;  %v1080_v23 = vadd.f32 %v1079_v8, %v887_v16  ;;  %v3186_v36 = vpop.f32.mrf.mxu0  ;;  %v899_v8 = vadd.f32 %v3103_v19, %v3032_v38 }
 0x173   :  { %v1081_v45 = vpop.f32.mrf.mxu1 }
 0x174   :  { %v1295_v18 = vmax.f32 %v1076_v21, %v1231_v31  ;;  %v1082_v3 = vadd.f32 %v1081_v45, %v889_v48  ;;  %v1356_v63 = vpack.c.bf16 %v1294_v35, %v1292_v34  ;;  %v1232_v40 = vmul.f32 0.1, %v1080_v23  ;;  %v3192_v11 = vpop.f32.mrf.mxu0 }
 0x175   :  { %v1083_v60 = vpop.f32.mrf.mxu1  ;;  %v901_v48 = vadd.f32 %v3111_v24, %v3028_v37  ;;  %v907_v24 = vadd.f32 %v3127_v39, %v3028_v37  ;;  %v913_v39 = vadd.f32 %v3151_v13, %v3032_v38 }
 0x176   :  { %v1084_v55 = vadd.f32 %v1083_v60, %v891_v62  ;;  %v1357_v47 = vpack.c.bf16 %v1295_v18, %v1293_v53  ;;  %v1233_v28 = vmul.f32 0.1, %v1082_v3  ;;  %v1296_v31 = vmax.f32 %v1080_v23, %v1232_v40 }
 0x177   :  { %v1085_v42 = vpop.f32.mrf.mxu1 }
 0x178   :  { %v1234_v32 = vmul.f32 0.1, %v1084_v55  ;;  %v1086_v6 = vadd.f32 %v1085_v42, %v893_v58  ;;  %1624 = vmatprep.mubr.bf16.mxu0 %v1357_v47  ;;  %v1297_v43 = vmax.f32 %v1082_v3, %v1233_v28 }
 0x179   :  { %v1089_v21 = vpop.f32.mrf.mxu1  ;;  %1625 = vmatmul.mubr.bf16.vlgmr.msra.gmra.mxu0 %v1356_v63  ;;  %v909_v63 = vadd.f32 %v3135_v52, %v3032_v38 }
 0x17a   :  { %v1235_v9 = vmul.f32 0.1, %v1086_v6  ;;  %v1298_v60 = vmax.f32 %v1084_v55, %v1234_v32  ;;  %v1090_v35 = vadd.f32 %v1089_v21, %v897_v4  ;;  %v3198_v32 = vpop.f32.mrf.mxu0  ;;  %v911_v21 = vadd.f32 %v3143_v1, %v3028_v37 }
 0x17b   :  { %v1091_v16 = vpop.f32.mrf.mxu1  ;;  %v917_v1 = vadd.f32 %v3159_v26, %v3028_v37  ;;  %v923_v26 = vadd.f32 %v3180_v50, %v3032_v38 }
 0x17c   :  { %v1299_v42 = vmax.f32 %v1086_v6, %v1235_v9  ;;  %v1092_v47 = vadd.f32 %v1091_v16, %v899_v8  ;;  %v1358_v18 = vpack.c.bf16 %v1298_v60, %v1296_v31  ;;  %v1236_v58 = vmul.f32 0.1, %v1090_v35  ;;  %v932_v40 = vpop.f32.mrf.mxu0 }
 0x17d   :  { %v1093_v45 = vpop.f32.mrf.mxu1 }
 0x17e   :  { %v1094_v53 = vadd.f32 %v1093_v45, %v901_v48  ;;  %v1359_v62 = vpack.c.bf16 %v1299_v42, %v1297_v43  ;;  %v1237_v55 = vmul.f32 0.1, %v1092_v47  ;;  %v1300_v60 = vmax.f32 %v1090_v35, %v1236_v58  ;;  %v936_v45 = vpop.f32.mrf.mxu0 }
 0x17f   :  { %v1095_v19 = vpop.f32.mrf.mxu1  ;;  %v919_v35 = vadd.f32 %v3168_v57, %v3032_v38  ;;  %v921_v58 = vadd.f32 %v3174_v33, %v3028_v37  ;;  %v927_v33 = vadd.f32 %v3186_v36, %v3028_v37  ;;  %v933_v36 = vadd.f32 %v932_v40, %v3032_v38 }
 0x180   :  { %v1238_v34 = vmul.f32 0.1, %v1094_v53  ;;  %v1096_v3 = vadd.f32 %v1095_v19, %v903_v14  ;;  %1634 = vmatprep.mubr.bf16.mxu0 %v1359_v62  ;;  %v1301_v4 = vmax.f32 %v1092_v47, %v1237_v55 }
 0x181   :  { %v1099_v23 = vpop.f32.mrf.mxu1  ;;  %1635 = vmatmul.mubr.bf16.gmra.mxu0 %v1358_v18 }
 0x182   :  { %v1239_v29 = vmul.f32 0.1, %v1096_v3  ;;  %v1302_v28 = vmax.f32 %v1094_v53, %v1238_v34  ;;  %v1100_v16 = vadd.f32 %v1099_v23, %v907_v24  ;;  %v938_v34 = vpop.f32.mrf.mxu0 }
 0x183   :  { %v1101_v6 = vpop.f32.mrf.mxu1 }
 0x184   :  { %v1303_v8 = vmax.f32 %v1096_v3, %v1239_v29  ;;  %v1102_v9 = vadd.f32 %v1101_v6, %v909_v63  ;;  %v1360_v52 = vpack.c.bf16 %v1302_v28, %v1300_v60  ;;  %v1240_v47 = vmul.f32 0.1, %v1100_v16 }
 0x185   :  { %v1103_v43 = vpop.f32.mrf.mxu1 }
 0x186   :  { %v1104_v48 = vadd.f32 %v1103_v43, %v911_v21  ;;  %v1361_v42 = vpack.c.bf16 %v1303_v8, %v1301_v4  ;;  %v1241_v14 = vmul.f32 0.1, %v1102_v9  ;;  %v1304_v63 = vmax.f32 %v1100_v16, %v1240_v47  ;;  %v940_v8 = vpop.f32.mrf.mxu0 }
 0x187   :  { %v1105_v31 = vpop.f32.mrf.mxu1  ;;  %v929_v16 = vadd.f32 %v3192_v11, %v3032_v38 }
 0x188   :  { %v1242_v53 = vmul.f32 0.1, %v1104_v48  ;;  %v1106_v62 = vadd.f32 %v1105_v31, %v913_v39  ;;  %1644 = vmatprep.mubr.bf16.mxu0 %v1361_v42  ;;  %v1305_v3 = vmax.f32 %v1102_v9, %v1241_v14 }
 0x189   :  { %v1109_v19 = vpop.f32.mrf.mxu1  ;;  %1645 = vmatmul.mubr.bf16.gmra.mxu0 %v1360_v52  ;;  %v942_v52 = vpop.f32.mrf.mxu0 }
 0x18a   :  { %v1243_v18 = vmul.f32 0.1, %v1106_v62  ;;  %v1306_v13 = vmax.f32 %v1104_v48, %v1242_v53  ;;  %v1110_v29 = vadd.f32 %v1109_v19, %v917_v1  ;;  %v931_v53 = vadd.f32 %v3198_v32, %v3028_v37 }
 0x18b   :  { %v1111_v55 = vpop.f32.mrf.mxu1  ;;  %v946_v11 = vpop.f32.mrf.mxu0 }
 0x18c   :  { %v1307_v24 = vmax.f32 %v1106_v62, %v1243_v18  ;;  %v1112_v23 = vadd.f32 %v1111_v55, %v919_v35  ;;  %v1362_v57 = vpack.c.bf16 %v1306_v13, %v1304_v63  ;;  %v1244_v9 = vmul.f32 0.1, %v1110_v29 }
 0x18d   :  { %v1113_v28 = vpop.f32.mrf.mxu1  ;;  %v948_v40 = vpop.f32.mrf.mxu0 }
 0x18e   :  { %v1114_v6 = vadd.f32 %v1113_v28, %v921_v58  ;;  %v1363_v4 = vpack.c.bf16 %v1307_v24, %v1305_v3  ;;  %v1245_v60 = vmul.f32 0.1, %v1112_v23  ;;  %v1308_v1 = vmax.f32 %v1110_v29, %v1244_v9 }
 0x18f   :  { %v1115_v21 = vpop.f32.mrf.mxu1  ;;  %v937_v28 = vadd.f32 %v936_v45, %v3028_v37  ;;  %v939_v29 = vadd.f32 %v938_v34, %v3032_v38 }
 0x190   :  { %v1246_v43 = vmul.f32 0.1, %v1114_v6  ;;  %v1116_v39 = vadd.f32 %v1115_v21, %v923_v26  ;;  %1654 = vmatprep.mubr.bf16.mxu0 %v1363_v4  ;;  %v1309_v14 = vmax.f32 %v1112_v23, %v1245_v60 }
 0x191   :  { %v1119_v48 = vpop.f32.mrf.mxu1  ;;  %1655 = vmatmul.mubr.bf16.gmra.mxu0 %v1362_v57  ;;  %v941_v57 = vadd.f32 %v940_v8, %v3028_v37 }
 0x192   :  { %v1247_v42 = vmul.f32 0.1, %v1116_v39  ;;  %v1310_v50 = vmax.f32 %v1114_v6, %v1246_v43  ;;  %v1120_v19 = vadd.f32 %v1119_v48, %v927_v33  ;;  %v943_v48 = vadd.f32 %v942_v52, %v3032_v38 }
 0x193   :  { %v1121_v31 = vpop.f32.mrf.mxu1 }
 0x194   :  { %v1311_v62 = vmax.f32 %v1116_v39, %v1247_v42  ;;  %v1122_v47 = vadd.f32 %v1121_v31, %v929_v16  ;;  %v1364_v3 = vpack.c.bf16 %v1310_v50, %v1308_v1  ;;  %v1248_v23 = vmul.f32 0.1, %v1120_v19  ;;  %v950_v42 = vpop.f32.mrf.mxu0 }
 0x195   :  { %v1123_v35 = vpop.f32.mrf.mxu1  ;;  %v949_v1 = vadd.f32 %v948_v40, %v3032_v38 }
 0x196   :  { %v1124_v18 = vadd.f32 %v1123_v35, %v931_v53  ;;  %v1365_v13 = vpack.c.bf16 %v1311_v62, %v1309_v14  ;;  %v1249_v58 = vmul.f32 0.1, %v1122_v47  ;;  %v1312_v39 = vmax.f32 %v1120_v19, %v1248_v23 }
 0x197   :  { %v1125_v55 = vpop.f32.mrf.mxu1 }
 0x198   :  { %v1250_v24 = vmul.f32 0.1, %v1124_v18  ;;  %v1126_v63 = vadd.f32 %v1125_v55, %v933_v36  ;;  %1664 = vmatprep.mubr.bf16.mxu0 %v1365_v13  ;;  %v1313_v21 = vmax.f32 %v1122_v47, %v1249_v58  ;;  %v947_v47 = vadd.f32 %v946_v11, %v3028_v37  ;;  %v952_v36 = vpop.f32.mrf.mxu0 }
 0x199   :  { %v1129_v32 = vpop.f32.mrf.mxu1  ;;  %1665 = vmatmul.mubr.bf16.gmra.mxu0 %v1364_v3  ;;  %v951_v13 = vadd.f32 %v950_v42, %v3028_v37  ;;  %v953_v23 = vadd.f32 %v952_v36, %v3032_v38 }
 0x19a   :  { %v1251_v26 = vmul.f32 0.1, %v1126_v63  ;;  %v1314_v6 = vmax.f32 %v1124_v18, %v1250_v24  ;;  %v1130_v9 = vadd.f32 %v1129_v32, %v937_v28 }
 0x19b   :  { %v1131_v4 = vpop.f32.mrf.mxu1 }
 0x19c   :  { %v1315_v60 = vmax.f32 %v1126_v63, %v1251_v26  ;;  %v1132_v43 = vadd.f32 %v1131_v4, %v939_v29  ;;  %v1366_v31 = vpack.c.bf16 %v1314_v6, %v1312_v39  ;;  %v1252_v62 = vmul.f32 0.1, %v1130_v9 }
 0x19d   :  { %v1133_v33 = vpop.f32.mrf.mxu1 }
 0x19e   :  { %v1134_v16 = vadd.f32 %v1133_v33, %v941_v57  ;;  %v1367_v45 = vpack.c.bf16 %v1315_v60, %v1313_v21  ;;  %v1253_v34 = vmul.f32 0.1, %v1132_v43  ;;  %v1316_v58 = vmax.f32 %v1130_v9, %v1252_v62 }
 0x19f   :  { %v1135_v50 = vpop.f32.mrf.mxu1 }
 0x1a0   :  { %v1254_v14 = vmul.f32 0.1, %v1134_v16  ;;  %v1136_v53 = vadd.f32 %v1135_v50, %v943_v48  ;;  %1674 = vmatprep.mubr.bf16.mxu0 %v1367_v45  ;;  %v1317_v18 = vmax.f32 %v1132_v43, %v1253_v34 }
 0x1a1   :  { %v1139_v8 = vpop.f32.mrf.mxu1  ;;  %1675 = vmatmul.mubr.bf16.gmra.mxu0 %v1366_v31 }
 0x1a2   :  { %v1255_v19 = vmul.f32 0.1, %v1136_v53  ;;  %v1318_v35 = vmax.f32 %v1134_v16, %v1254_v14  ;;  %v1140_v24 = vadd.f32 %v1139_v8, %v947_v47 }
 0x1a3   :  { %v1141_v52 = vpop.f32.mrf.mxu1 }
 0x1a4   :  { %v1319_v55 = vmax.f32 %v1136_v53, %v1255_v19  ;;  %v1142_v3 = vadd.f32 %v1141_v52, %v949_v1  ;;  %v1368_v29 = vpack.c.bf16 %v1318_v35, %v1316_v58  ;;  %v1256_v40 = vmul.f32 0.1, %v1140_v24 }
 0x1a5   :  { %v1143_v63 = vpop.f32.mrf.mxu1 }
 0x1a6   :  { %v1144_v28 = vadd.f32 %v1143_v63, %v951_v13  ;;  %v1369_v11 = vpack.c.bf16 %v1319_v55, %v1317_v18  ;;  %v1257_v26 = vmul.f32 0.1, %v1142_v3  ;;  %v1320_v33 = vmax.f32 %v1140_v24, %v1256_v40 }
 0x1a7   :  { %v1145_v32 = vpop.f32.mrf.mxu1 }
 0x1a8   :  { %v1258_v6 = vmul.f32 0.1, %v1144_v28  ;;  %v1146_v4 = vadd.f32 %v1145_v32, %v953_v23  ;;  %1684 = vmatprep.mubr.bf16.mxu0 %v1369_v11  ;;  %v1321_v39 = vmax.f32 %v1142_v3, %v1257_v26 }
 0x1a9   :  { %v1149_v21 = vpop.f32.mrf.mxu1  ;;  %1685 = vmatmul.mubr.bf16.gmra.mxu0 %v1368_v29 }
 0x1aa   :  { %v1259_v57 = vmul.f32 0.1, %v1146_v4  ;;  %v1150_v37 = vadd.f32 %v1149_v21, %v3037_v41  ;;  %v1322_v60 = vmax.f32 %v1144_v28, %v1258_v6 }
 0x1ab   :  { %v1151_v43 = vpop.f32.mrf.mxu1 }
 0x1ac   :  { %v1323_v9 = vmax.f32 %v1146_v4, %v1259_v57  ;;  %v1152_v38 = vadd.f32 %v1151_v43, %v3042_v44  ;;  %v1260_v16 = vmul.f32 0.1, %v1150_v37  ;;  %v1370_v31 = vpack.c.bf16 %v1322_v60, %v1320_v33 }
 0x1ad   :  { %v1153_v48 = vpop.f32.mrf.mxu1 }
 0x1ae   :  { %v1154_v45 = vadd.f32 %v1153_v48, %v3045_v46  ;;  %v1371_v42 = vpack.c.bf16 %v1323_v9, %v1321_v39  ;;  %v1261_v34 = vmul.f32 0.1, %v1152_v38  ;;  %v1324_v62 = vmax.f32 %v1150_v37, %v1260_v16 }
 0x1af   :  { %v1155_v50 = vpop.f32.mrf.mxu1 }
 0x1b0   :  { %v1262_v14 = vmul.f32 0.1, %v1154_v45  ;;  %v1156_v53 = vadd.f32 %v1155_v50, %v3050_v49  ;;  %1694 = vmatprep.mubr.bf16.mxu0 %v1371_v42  ;;  %v1325_v19 = vmax.f32 %v1152_v38, %v1261_v34 }
 0x1b1   :  { %v1159_v41 = vpop.f32.mrf.mxu1  ;;  %1695 = vmatmul.mubr.bf16.gmra.mxu0 %v1370_v31 }
 0x1b2   :  { %v1326_v47 = vmax.f32 %v1154_v45, %v1262_v14  ;;  %v1263_v8 = vmul.f32 0.1, %v1156_v53  ;;  %v1160_v44 = vadd.f32 %v1159_v41, %v3053_v51 }
 0x1b3   :  { %v1161_v1 = vpop.f32.mrf.mxu1 }
 0x1b4   :  { %v1327_v35 = vmax.f32 %v1156_v53, %v1263_v8  ;;  %v1162_v46 = vadd.f32 %v1161_v1, %v3058_v54  ;;  %v1372_v36 = vpack.c.bf16 %v1326_v47, %v1324_v62  ;;  %v1264_v18 = vmul.f32 0.1, %v1160_v44 }
 0x1b5   :  { %v1163_v52 = vpop.f32.mrf.mxu1 }
 0x1b6   :  { %v1164_v13 = vadd.f32 %v1163_v52, %v3061_v56  ;;  %v1373_v55 = vpack.c.bf16 %v1327_v35, %v1325_v19  ;;  %v1265_v3 = vmul.f32 0.1, %v1162_v46  ;;  %v1328_v51 = vmax.f32 %v1160_v44, %v1264_v18 }
 0x1b7   :  { %v1165_v49 = vpop.f32.mrf.mxu1 }
 0x1b8   :  { %v1266_v58 = vmul.f32 0.1, %v1164_v13  ;;  %v1166_v24 = vadd.f32 %v1165_v49, %v3066_v59  ;;  %1704 = vmatprep.mubr.bf16.mxu0 %v1373_v55  ;;  %v1329_v32 = vmax.f32 %v1162_v46, %v1265_v3 }
 0x1b9   :  { %v1169_v63 = vpop.f32.mrf.mxu1  ;;  %1705 = vmatmul.mubr.bf16.gmra.mxu0 %v1372_v36 }
 0x1ba   :  { %v1330_v23 = vmax.f32 %v1164_v13, %v1266_v58  ;;  %v1267_v28 = vmul.f32 0.1, %v1166_v24  ;;  %v1170_v11 = vadd.f32 %v1169_v63, %v3069_v61 }
 0x1bb   :  { %v1171_v54 = vpop.f32.mrf.mxu1 }
 0x1bc   :  { %v1331_v29 = vmax.f32 %v1166_v24, %v1267_v28  ;;  %v1172_v26 = vadd.f32 %v1171_v54, %v3074_v0  ;;  %v1374_v56 = vpack.c.bf16 %v1330_v23, %v1328_v51  ;;  %v1268_v4 = vmul.f32 0.1, %v1170_v11  ;;  %v3365_v54 = vld [vmem:[#allocation13_spill] sm:$0xff] }
 0x1bd   :  { %v1173_v6 = vpop.f32.mrf.mxu1 }
 0x1be   :  { %v1174_v40 = vadd.f32 %v1173_v6, %v3077_v2  ;;  %v1375_v21 = vpack.c.bf16 %v1331_v29, %v1329_v32  ;;  %v1269_v57 = vmul.f32 0.1, %v1172_v26  ;;  %v1332_v61 = vmax.f32 %v1170_v11, %v1268_v4  ;;  %v3366_v6 = vld [vmem:[#allocation14_spill] sm:$0xff] }
 0x1bf   :  { %v1175_v59 = vpop.f32.mrf.mxu1 }
 0x1c0   :  { %v1270_v37 = vmul.f32 0.1, %v1174_v40  ;;  %v1176_v60 = vadd.f32 %v1175_v59, %v3082_v5  ;;  %1714 = vmatprep.mubr.bf16.mxu0 %v1375_v21  ;;  %v1333_v33 = vmax.f32 %v1172_v26, %v1269_v57  ;;  %v3367_v57 = vld [vmem:[#allocation15_spill] sm:$0xff] }
 0x1c1   :  { %v1179_v43 = vpop.f32.mrf.mxu1  ;;  %1715 = vmatmul.mubr.bf16.gmra.mxu0 %v1374_v56 }
 0x1c2   :  { %v1334_v39 = vmax.f32 %v1174_v40, %v1270_v37  ;;  %v1271_v9 = vmul.f32 0.1, %v1176_v60  ;;  %v1180_v38 = vadd.f32 %v1179_v43, %v3085_v7 }
 0x1c3   :  { %v1181_v0 = vpop.f32.mrf.mxu1 }
 0x1c4   :  { %v1335_v48 = vmax.f32 %v1176_v60, %v1271_v9  ;;  %v1182_v16 = vadd.f32 %v1181_v0, %v3090_v10  ;;  %v1376_v2 = vpack.c.bf16 %v1334_v39, %v1332_v61  ;;  %v1272_v42 = vmul.f32 0.1, %v1180_v38  ;;  %v3368_v61 = vld [vmem:[#allocation16_spill] sm:$0xff] }
 0x1c5   :  { %v1183_v45 = vpop.f32.mrf.mxu1 }
 0x1c6   :  { %v1184_v50 = vadd.f32 %v1183_v45, %v3093_v12  ;;  %v1377_v31 = vpack.c.bf16 %v1335_v48, %v1333_v33  ;;  %v1273_v34 = vmul.f32 0.1, %v1182_v16  ;;  %v1336_v7 = vmax.f32 %v1180_v38, %v1272_v42  ;;  %v3369_v33 = vld [vmem:[#allocation17_spill] sm:$0xff] }
 0x1c7   :  { %v1185_v5 = vpop.f32.mrf.mxu1 }
 0x1c8   :  { %v1274_v14 = vmul.f32 0.1, %v1184_v50  ;;  %v1186_v53 = vadd.f32 %v1185_v5, %v3098_v15  ;;  %1724 = vmatprep.mubr.bf16.mxu0 %v1377_v31  ;;  %v1337_v44 = vmax.f32 %v1182_v16, %v1273_v34 }
 0x1c9   :  { %v1189_v41 = vpop.f32.mrf.mxu1  ;;  %1725 = vmatmul.mubr.bf16.gmra.mxu0 %v1376_v2 }
 0x1ca   :  { %v1338_v62 = vmax.f32 %v1184_v50, %v1274_v14  ;;  %v1275_v47 = vmul.f32 0.1, %v1186_v53  ;;  %v1190_v8 = vadd.f32 %v1189_v41, %v3101_v17  ;;  %v3370_v50 = vld [vmem:[#allocation18_spill] sm:$0xff]  ;;  %v3371_v41 = vld [vmem:[#allocation19_spill] sm:$0xff] }
 0x1cb   :  { %v1191_v10 = vpop.f32.mrf.mxu1 }
 0x1cc   :  { %v1339_v1 = vmax.f32 %v1186_v53, %v1275_v47  ;;  %v1192_v19 = vadd.f32 %v1191_v10, %v3106_v20  ;;  %v1378_v12 = vpack.c.bf16 %v1338_v62, %v1336_v7  ;;  %v1276_v46 = vmul.f32 0.1, %v1190_v8  ;;  %v3372_v10 = vld [vmem:[#allocation20_spill] sm:$0xff] }
 0x1cd   :  { %v1193_v35 = vpop.f32.mrf.mxu1 }
 0x1ce   :  { %v1194_v36 = vadd.f32 %v1193_v35, %v3109_v22  ;;  %v1379_v52 = vpack.c.bf16 %v1339_v1, %v1337_v44  ;;  %v1277_v18 = vmul.f32 0.1, %v1192_v19  ;;  %v1340_v17 = vmax.f32 %v1190_v8, %v1276_v46  ;;  %v3373_v35 = vld [vmem:[#allocation21_spill] sm:$0xff] }
 0x1cf   :  { %v1195_v15 = vpop.f32.mrf.mxu1 }
 0x1d0   :  { %v1278_v13 = vmul.f32 0.1, %v1194_v36  ;;  %v1196_v55 = vadd.f32 %v1195_v15, %v3114_v25  ;;  %1734 = vmatprep.mubr.bf16.mxu0 %v1379_v52  ;;  %v1341_v63 = vmax.f32 %v1192_v19, %v1277_v18 }
 0x1d1   :  { %v1199_v49 = vpop.f32.mrf.mxu1  ;;  %1735 = vmatmul.mubr.bf16.gmra.mxu0 %v1378_v12 }
 0x1d2   :  { %v1342_v3 = vmax.f32 %v1194_v36, %v1278_v13  ;;  %v1279_v58 = vmul.f32 0.1, %v1196_v55  ;;  %v1200_v24 = vadd.f32 %v1199_v49, %v3117_v27  ;;  %v3374_v13 = vld [vmem:[#allocation22_spill] sm:$0xff] }
 0x1d3   :  { %v1201_v20 = vpop.f32.mrf.mxu1 }
 0x1d4   :  { %v1343_v51 = vmax.f32 %v1196_v55, %v1279_v58  ;;  %v1202_v23 = vadd.f32 %v1201_v20, %v3122_v30  ;;  %v1380_v22 = vpack.c.bf16 %v1342_v3, %v1340_v17  ;;  %v1280_v11 = vmul.f32 0.1, %v1200_v24 }
 0x1d5   :  { %v1203_v28 = vpop.f32.mrf.mxu1 }
 0x1d6   :  { %v1204_v32 = vadd.f32 %v1203_v28, %v3365_v54  ;;  %v1381_v29 = vpack.c.bf16 %v1343_v51, %v1341_v63  ;;  %v1281_v26 = vmul.f32 0.1, %v1202_v23  ;;  %v1344_v27 = vmax.f32 %v1200_v24, %v1280_v11  ;;  %v1420_v51 = vld [vmem:[%s3348_s4] sm:$0x3]  ;;  %s2976_s4 = smov [#allocation8]  }
 0x1d7   :  { %v1205_v25 = vpop.f32.mrf.mxu1  ;;  %s2174_s12 = sshll.u32 %s2976_s4, 4  ;;  %s2175_s12 = int_to_ptr.vmem [resolvable:$true] %s2174_s12 }
 0x1d8   :  { %v1282_v56 = vmul.f32 0.1, %v1204_v32  ;;  %v1206_v4 = vadd.f32 %v1205_v25, %v3366_v6  ;;  %1744 = vmatprep.mubr.bf16.mxu0 %v1381_v29  ;;  %v1345_v60 = vmax.f32 %v1202_v23, %v1281_v26  ;;  %v3375_v23 = vld [vmem:[#allocation12_spill] sm:$0xff]  ;;  %s2943_s13 = scalar_lea.vmem %s2175_s12, 8192  ;;  %p2948_p2 = scmp.lt.s32.totalorder %s2175_s12, %s2175_s12 }
 0x1d9   :  { %v1209_v40 = vpop.f32.mrf.mxu1  ;;  %1745 = vmatmul.mubr.bf16.gmra.mxu0 %v1380_v22  ;;  %v3376_v22 = vsub.s32 0, %v3375_v23  ;;  %v3377_v11 = vsub.s32 1, %v3375_v23  ;;  %p2944_p1 = scmp.ne.s32.totalorder %s2175_s12, %s2943_s13  ;;  %p2949_p3 = scmp.lt.s32.totalorder %s2943_s13, %s2943_s13 }
 0x1da   :  { %v1346_v21 = vmax.f32 %v1204_v32, %v1282_v56  ;;  %v1283_v59 = vmul.f32 0.1, %v1206_v4  ;;  %v1210_v37 = vadd.f32 %v1209_v40, %v3367_v57 }
 0x1db   :  { %v1211_v30 = vpop.f32.mrf.mxu1  ;;  %v3268_v28 = vrot.slane %v1420_v51, %v3376_v22  ;;  %v3272_v54 = vrot.slane %v1420_v51, %v3377_v11  ;;  %p2950_p4 = por %p2949_p3, %p2948_p2 }
 0x1dc   :  { %v1347_v43 = vmax.f32 %v1206_v4, %v1283_v59  ;;  %v1212_v39 = vadd.f32 %v1211_v30, %v3368_v61  ;;  %v1382_v9 = vpack.c.bf16 %v1346_v21, %v1344_v27  ;;  %v1284_v0 = vmul.f32 0.1, %v1210_v37 }
 0x1dd   :  { %v1213_v38 = vpop.f32.mrf.mxu1  ;;  %p2951_p5 = pnand %p2950_p4, %p2944_p1 }
 0x1de   :  { %v1214_v48 = vadd.f32 %v1213_v38, %v3369_v33  ;;  %v1383_v16 = vpack.c.bf16 %v1347_v43, %v1345_v60  ;;  %v1285_v45 = vmul.f32 0.1, %v1212_v39  ;;  %v1348_v34 = vmax.f32 %v1210_v37, %v1284_v0 }
 0x1df   :  { %v1215_v2 = vpop.f32.mrf.mxu1 }
 0x1e0   :  { %v1286_v42 = vmul.f32 0.1, %v1214_v48  ;;  %v1216_v31 = vadd.f32 %v1215_v2, %v3370_v50  ;;  %1754 = vmatprep.mubr.bf16.mxu0 %v1383_v16  ;;  %v1349_v47 = vmax.f32 %v1212_v39, %v1285_v45 }
 0x1e1   :  { %v1219_v5 = vpop.f32.mrf.mxu1  ;;  %1755 = vmatmul.mubr.bf16.gmra.mxu0 %v1382_v9 }
 0x1e2   :  { %v1350_v14 = vmax.f32 %v1214_v48, %v1286_v42  ;;  %v1287_v53 = vmul.f32 0.1, %v1216_v31  ;;  %v1220_v7 = vadd.f32 %v1219_v5, %v3371_v41 }
 0x1e3   :  { %v1221_v62 = vpop.f32.mrf.mxu1 }
 0x1e4   :  { %v1351_v8 = vmax.f32 %v1216_v31, %v1287_v53  ;;  %v1222_v44 = vadd.f32 %v1221_v62, %v3372_v10  ;;  %v1384_v1 = vpack.c.bf16 %v1350_v14, %v1348_v34  ;;  %v1288_v12 = vmul.f32 0.1, %v1220_v7 }
 0x1e5   :  { %v1223_v19 = vpop.f32.mrf.mxu1 }
 0x1e6   :  { %v1224_v46 = vadd.f32 %v1223_v19, %v3373_v35  ;;  %v1385_v36 = vpack.c.bf16 %v1351_v8, %v1349_v47  ;;  %v1289_v15 = vmul.f32 0.1, %v1222_v44  ;;  %v1352_v49 = vmax.f32 %v1220_v7, %v1288_v12 }
 0x1e7   :  { %v1225_v52 = vpop.f32.mrf.mxu1 }
 0x1e8   :  { %v1290_v18 = vmul.f32 0.1, %v1224_v46  ;;  %v1226_v55 = vadd.f32 %v1225_v52, %v3374_v13  ;;  %1764 = vmatprep.mubr.bf16.mxu0 %v1385_v36  ;;  %v1353_v58 = vmax.f32 %v1222_v44, %v1289_v15 }
 0x1e9   :  { %1765 = vmatmul.mubr.bf16.gmra.mxu0 %v1384_v1 }
 0x1ea   :  { %v1354_v17 = vmax.f32 %v1224_v46, %v1290_v18  ;;  %v1291_v3 = vmul.f32 0.1, %v1226_v55 }
 0x1ec   :  { %v1355_v24 = vmax.f32 %v1226_v55, %v1291_v3  ;;  %v1386_v20 = vpack.c.bf16 %v1354_v17, %v1352_v49 }
 0x1ee   :  { %v1387_v63 = vpack.c.bf16 %v1355_v24, %v1353_v58 }
 0x1f0   :  { %1774 = vmatprep.mubr.bf16.mxu0 %v1387_v63 }
 0x1f1   :  { %1775 = vmatmul.mubr.bf16.gmra.mxu0 %v1386_v20 }
 0x239   :  { %v1626_v32 = vpop.f32.mrf.mxu0 }
 0x23a   :  { %v1627_v29 = vadd.f32 %v1626_v32, %v3268_v28 }
 0x23b   :  { %v1628_v25 = vpop.f32.mrf.mxu0 }
 0x23c   :  { %v1785_v26 = vsub.f32 0.0, %v1627_v29  ;;  %v1629_v56 = vadd.f32 %v1628_v25, %v3272_v54 }
 0x23d   :  { %v1630_v6 = vpop.f32.mrf.mxu0 }
 0x23e   :  { %v1849_v4 = vmul.f32 1.442695, %v1785_v26  ;;  %v1786_v40 = vsub.f32 0.0, %v1629_v56  ;;  %v1631_v27 = vadd.f32 %v1630_v6, %v3268_v28 }
 0x23f   :  { %v1632_v21 = vpop.f32.mrf.mxu0 }
 0x240   :  { %2627 = vpow2.f32 %v1849_v4  ;;  %v1851_v59 = vmul.f32 1.442695, %v1786_v40  ;;  %v1787_v57 = vsub.f32 0.0, %v1631_v27  ;;  %v1633_v37 = vadd.f32 %v1632_v21, %v3272_v54 }
 0x241   :  { %v1636_v30 = vpop.f32.mrf.mxu0 }
 0x242   :  { %2629 = vpow2.f32 %v1851_v59  ;;  %v1853_v60 = vmul.f32 1.442695, %v1787_v57  ;;  %v1788_v43 = vsub.f32 0.0, %v1633_v37  ;;  %v1637_v61 = vadd.f32 %v1636_v30, %v3268_v28 }
 0x243   :  { %v1638_v39 = vpop.f32.mrf.mxu0 }
 0x244   :  { %2631 = vpow2.f32 %v1853_v60  ;;  %v1855_v9 = vmul.f32 1.442695, %v1788_v43  ;;  %v1789_v38 = vsub.f32 0.0, %v1637_v61  ;;  %v1639_v0 = vadd.f32 %v1638_v39, %v3272_v54 }
 0x245   :  { %v1640_v33 = vpop.f32.mrf.mxu0 }
 0x246   :  { %2633 = vpow2.f32 %v1855_v9  ;;  %v1857_v48 = vmul.f32 1.442695, %v1789_v38  ;;  %v1790_v16 = vsub.f32 0.0, %v1639_v0  ;;  %v1641_v2 = vadd.f32 %v1640_v33, %v3268_v28 }
 0x247   :  { %v1642_v45 = vpop.f32.mrf.mxu0 }
 0x248   :  { %2635 = vpow2.f32 %v1857_v48  ;;  %v1859_v42 = vmul.f32 1.442695, %v1790_v16  ;;  %v1791_v50 = vsub.f32 0.0, %v1641_v2  ;;  %v1643_v31 = vadd.f32 %v1642_v45, %v3272_v54 }
 0x249   :  { %v1646_v5 = vpop.f32.mrf.mxu0 }
 0x24a   :  { %2637 = vpow2.f32 %v1859_v42  ;;  %v1861_v34 = vmul.f32 1.442695, %v1791_v50  ;;  %v1792_v14 = vsub.f32 0.0, %v1643_v31  ;;  %v1647_v53 = vadd.f32 %v1646_v5, %v3268_v28 }
 0x24b   :  { %v1648_v41 = vpop.f32.mrf.mxu0 }
 0x24c   :  { %2639 = vpow2.f32 %v1861_v34  ;;  %v1863_v7 = vmul.f32 1.442695, %v1792_v14  ;;  %v1793_v62 = vsub.f32 0.0, %v1647_v53  ;;  %v1649_v47 = vadd.f32 %v1648_v41, %v3272_v54 }
 0x24d   :  { %v2628_v8 = vpop.eup %2627  ;;  %v1650_v10 = vpop.f32.mrf.mxu0 }
 0x24e   :  { %v1977_v44 = vadd.f32 1.0, %v2628_v8  ;;  %2641 = vpow2.f32 %v1863_v7  ;;  %v1865_v1 = vmul.f32 1.442695, %v1793_v62  ;;  %v1794_v19 = vsub.f32 0.0, %v1649_v47 }
 0x24f   :  { %v2630_v12 = vpop.eup %2629  ;;  %v1651_v35 = vadd.f32 %v1650_v10, %v3268_v28  ;;  %v1652_v46 = vpop.f32.mrf.mxu0 }
 0x250   :  { %2643 = vrcp.f32 %v1977_v44  ;;  %v1978_v36 = vadd.f32 1.0, %v2630_v12  ;;  %v1867_v52 = vmul.f32 1.442695, %v1794_v19  ;;  %v1653_v15 = vadd.f32 %v1652_v46, %v3272_v54 }
 0x251   :  { %v2632_v18 = vpop.eup %2631  ;;  %2645 = vpow2.f32 %v1865_v1  ;;  %v1795_v13 = vsub.f32 0.0, %v1651_v35  ;;  %v1656_v55 = vpop.f32.mrf.mxu0 }
 0x252   :  { %2647 = vrcp.f32 %v1978_v36  ;;  %v1979_v49 = vadd.f32 1.0, %v2632_v18  ;;  %v1796_v17 = vsub.f32 0.0, %v1653_v15  ;;  %v1657_v3 = vadd.f32 %v1656_v55, %v3268_v28 }
 0x253   :  { %v2634_v58 = vpop.eup %2633  ;;  %2649 = vpow2.f32 %v1867_v52  ;;  %v1869_v24 = vmul.f32 1.442695, %v1795_v13  ;;  %v1658_v20 = vpop.f32.mrf.mxu0 }
 0x254   :  { %2651 = vrcp.f32 %v1979_v49  ;;  %v1980_v63 = vadd.f32 1.0, %v2634_v58  ;;  %v1871_v51 = vmul.f32 1.442695, %v1796_v17  ;;  %v1797_v23 = vsub.f32 0.0, %v1657_v3 }
 0x255   :  { %v2636_v22 = vpop.eup %2635  ;;  %2653 = vpow2.f32 %v1869_v24  ;;  %v1659_v11 = vadd.f32 %v1658_v20, %v3272_v54  ;;  %v1660_v32 = vpop.f32.mrf.mxu0 }
 0x256   :  { %2655 = vrcp.f32 %v1980_v63  ;;  %v1981_v29 = vadd.f32 1.0, %v2636_v22  ;;  %v1873_v25 = vmul.f32 1.442695, %v1797_v23  ;;  %v1661_v26 = vadd.f32 %v1660_v32, %v3268_v28 }
 0x257   :  { %v2638_v56 = vpop.eup %2637  ;;  %2657 = vpow2.f32 %v1871_v51  ;;  %v1798_v6 = vsub.f32 0.0, %v1659_v11  ;;  %v1662_v4 = vpop.f32.mrf.mxu0 }
 0x258   :  { %2659 = vrcp.f32 %v1981_v29  ;;  %v1982_v40 = vadd.f32 1.0, %v2638_v56  ;;  %v1799_v27 = vsub.f32 0.0, %v1661_v26  ;;  %v1663_v21 = vadd.f32 %v1662_v4, %v3272_v54 }
 0x259   :  { %v2640_v59 = vpop.eup %2639  ;;  %2661 = vpow2.f32 %v1873_v25  ;;  %v1875_v57 = vmul.f32 1.442695, %v1798_v6  ;;  %v1666_v37 = vpop.f32.mrf.mxu0 }
 0x25a   :  { %2663 = vrcp.f32 %v1982_v40  ;;  %v1983_v30 = vadd.f32 1.0, %v2640_v59  ;;  %v1877_v60 = vmul.f32 1.442695, %v1799_v27  ;;  %v1800_v43 = vsub.f32 0.0, %v1663_v21 }
 0x25b   :  { %v2642_v61 = vpop.eup %2641  ;;  %2665 = vpow2.f32 %v1875_v57  ;;  %v1667_v39 = vadd.f32 %v1666_v37, %v3268_v28  ;;  %v1668_v9 = vpop.f32.mrf.mxu0 }
 0x25c   :  { %2667 = vrcp.f32 %v1983_v30  ;;  %v1984_v38 = vadd.f32 1.0, %v2642_v61  ;;  %v1879_v0 = vmul.f32 1.442695, %v1800_v43  ;;  %v1669_v33 = vadd.f32 %v1668_v9, %v3272_v54 }
 0x25d   :  { %v2644_v48 = vpop.eup %2643  ;;  %2669 = vpow2.f32 %v1877_v60  ;;  %v1801_v16 = vsub.f32 0.0, %v1667_v39  ;;  %v1670_v2 = vpop.f32.mrf.mxu0 }
 0x25e   :  { %v2646_v45 = vpop.eup %2645  ;;  %2105 = vst [vmem:[#allocation8] sm:$0xff] %v2644_v48  ;;  %2671 = vrcp.f32 %v1984_v38  ;;  %v1802_v42 = vsub.f32 0.0, %v1669_v33  ;;  %v1671_v50 = vadd.f32 %v1670_v2, %v3268_v28 }
 0x25f   :  { %v2648_v31 = vpop.eup %2647  ;;  %v1985_v5 = vadd.f32 1.0, %v2646_v45  ;;  %2673 = vpow2.f32 %v1879_v0  ;;  %v1881_v34 = vmul.f32 1.442695, %v1801_v16  ;;  %v1672_v14 = vpop.f32.mrf.mxu0 }
 0x260   :  { %v2650_v53 = vpop.eup %2649  ;;  %2106 = vst [vmem:[#allocation8 + $0x8] sm:$0xff] %v2648_v31  ;;  %v1883_v41 = vmul.f32 1.442695, %v1802_v42  ;;  %v1803_v7 = vsub.f32 0.0, %v1671_v50  ;;  %v1673_v62 = vadd.f32 %v1672_v14, %v3272_v54 }
 0x261   :  { %v2652_v47 = vpop.eup %2651  ;;  %2675 = vrcp.f32 %v1985_v5  ;;  %v1986_v8 = vadd.f32 1.0, %v2650_v53  ;;  %v1676_v10 = vpop.f32.mrf.mxu0 }
 0x262   :  { %v2654_v44 = vpop.eup %2653  ;;  %2107 = vst [vmem:[#allocation8 + $0x10] sm:$0xff] %v2652_v47  ;;  %2677 = vpow2.f32 %v1881_v34  ;;  %v1885_v1 = vmul.f32 1.442695, %v1803_v7  ;;  %v1804_v19 = vsub.f32 0.0, %v1673_v62  ;;  %v1677_v12 = vadd.f32 %v1676_v10, %v3268_v28 }
 0x263   :  { %v2656_v35 = vpop.eup %2655  ;;  %2679 = vrcp.f32 %v1986_v8  ;;  %v1987_v46 = vadd.f32 1.0, %v2654_v44  ;;  %v1678_v36 = vpop.f32.mrf.mxu0 }
 0x264   :  { %v2658_v52 = vpop.eup %2657  ;;  %2108 = vst [vmem:[#allocation8 + $0x18] sm:$0xff] %v2656_v35  ;;  %2681 = vpow2.f32 %v1883_v41  ;;  %v1887_v15 = vmul.f32 1.442695, %v1804_v19  ;;  %v1805_v18 = vsub.f32 0.0, %v1677_v12  ;;  %v1679_v13 = vadd.f32 %v1678_v36, %v3272_v54 }
 0x265   :  { %v2660_v55 = vpop.eup %2659  ;;  %2683 = vrcp.f32 %v1987_v46  ;;  %v1988_v49 = vadd.f32 1.0, %v2658_v52  ;;  %v1680_v17 = vpop.f32.mrf.mxu0 }
 0x266   :  { %v2662_v3 = vpop.eup %2661  ;;  %2109 = vst [vmem:[#allocation8 + $0x20] sm:$0xff] %v2660_v55  ;;  %2685 = vpow2.f32 %v1885_v1  ;;  %v1889_v58 = vmul.f32 1.442695, %v1805_v18  ;;  %v1806_v24 = vsub.f32 0.0, %v1679_v13  ;;  %v1681_v20 = vadd.f32 %v1680_v17, %v3268_v28 }
 0x267   :  { %v2664_v63 = vpop.eup %2663  ;;  %2687 = vrcp.f32 %v1988_v49  ;;  %v1989_v51 = vadd.f32 1.0, %v2662_v3  ;;  %v1682_v23 = vpop.f32.mrf.mxu0 }
 0x268   :  { %v2666_v22 = vpop.eup %2665  ;;  %2110 = vst [vmem:[#allocation8 + $0x28] sm:$0xff] %v2664_v63  ;;  %2689 = vpow2.f32 %v1887_v15  ;;  %v1891_v11 = vmul.f32 1.442695, %v1806_v24  ;;  %v1807_v32 = vsub.f32 0.0, %v1681_v20  ;;  %v1683_v29 = vadd.f32 %v1682_v23, %v3272_v54 }
 0x269   :  { %v2668_v25 = vpop.eup %2667  ;;  %2691 = vrcp.f32 %v1989_v51  ;;  %v1990_v26 = vadd.f32 1.0, %v2666_v22  ;;  %v1686_v56 = vpop.f32.mrf.mxu0 }
 0x26a   :  { %v2670_v6 = vpop.eup %2669  ;;  %2111 = vst [vmem:[#allocation8 + $0x30] sm:$0xff] %v2668_v25  ;;  %2693 = vpow2.f32 %v1889_v58  ;;  %v1893_v4 = vmul.f32 1.442695, %v1807_v32  ;;  %v1808_v40 = vsub.f32 0.0, %v1683_v29  ;;  %v1687_v27 = vadd.f32 %v1686_v56, %v3268_v28 }
 0x26b   :  { %v2672_v21 = vpop.eup %2671  ;;  %2695 = vrcp.f32 %v1990_v26  ;;  %v1991_v59 = vadd.f32 1.0, %v2670_v6  ;;  %v1688_v57 = vpop.f32.mrf.mxu0 }
 0x26c   :  { %v2674_v37 = vpop.eup %2673  ;;  %2112 = vst [vmem:[#allocation8 + $0x38] sm:$0xff] %v2672_v21  ;;  %2697 = vpow2.f32 %v1891_v11  ;;  %v1895_v30 = vmul.f32 1.442695, %v1808_v40  ;;  %v1809_v60 = vsub.f32 0.0, %v1687_v27  ;;  %v1689_v43 = vadd.f32 %v1688_v57, %v3272_v54 }
 0x26d   :  { %2699 = vrcp.f32 %v1991_v59  ;;  %v1992_v61 = vadd.f32 1.0, %v2674_v37  ;;  %v1690_v39 = vpop.f32.mrf.mxu0 }
 0x26e   :  { %v2676_v9 = vpop.eup %2675  ;;  %2701 = vpow2.f32 %v1893_v4  ;;  %v1897_v38 = vmul.f32 1.442695, %v1809_v60  ;;  %v1810_v0 = vsub.f32 0.0, %v1689_v43  ;;  %v1691_v33 = vadd.f32 %v1690_v39, %v3268_v28 }
 0x26f   :  { %v2678_v48 = vpop.eup %2677  ;;  %2113 = vst [vmem:[#allocation8 + $0x40] sm:$0xff] %v2676_v9  ;;  %2703 = vrcp.f32 %v1992_v61  ;;  %v1692_v16 = vpop.f32.mrf.mxu0 }
 0x270   :  { %v2680_v2 = vpop.eup %2679  ;;  %v1993_v45 = vadd.f32 1.0, %v2678_v48  ;;  %2705 = vpow2.f32 %v1895_v30  ;;  %v1899_v42 = vmul.f32 1.442695, %v1810_v0  ;;  %v1811_v50 = vsub.f32 0.0, %v1691_v33 }
 0x271   :  { %v2682_v31 = vpop.eup %2681  ;;  %2114 = vst [vmem:[#allocation8 + $0x48] sm:$0xff] %v2680_v2  ;;  %2707 = vpow2.f32 %v1897_v38  ;;  %v1693_v5 = vadd.f32 %v1692_v16, %v3272_v54  ;;  %v1696_v34 = vpop.f32.mrf.mxu0 }
 0x272   :  { %v2684_v14 = vpop.eup %2683  ;;  %2709 = vrcp.f32 %v1993_v45  ;;  %v1994_v53 = vadd.f32 1.0, %v2682_v31  ;;  %v1901_v41 = vmul.f32 1.442695, %v1811_v50  ;;  %v1697_v7 = vadd.f32 %v1696_v34, %v3268_v28 }
 0x273   :  { %v2686_v62 = vpop.eup %2685  ;;  %2115 = vst [vmem:[#allocation8 + $0x50] sm:$0xff] %v2684_v14  ;;  %2711 = vpow2.f32 %v1899_v42  ;;  %v1812_v47 = vsub.f32 0.0, %v1693_v5  ;;  %v1698_v8 = vpop.f32.mrf.mxu0 }
 0x274   :  { %v2688_v10 = vpop.eup %2687  ;;  %2713 = vrcp.f32 %v1994_v53  ;;  %v1995_v44 = vadd.f32 1.0, %v2686_v62  ;;  %v1813_v1 = vsub.f32 0.0, %v1697_v7  ;;  %v1699_v19 = vadd.f32 %v1698_v8, %v3272_v54 }
 0x275   :  { %v2690_v12 = vpop.eup %2689  ;;  %2116 = vst [vmem:[#allocation8 + $0x58] sm:$0xff] %v2688_v10  ;;  %2715 = vpow2.f32 %v1901_v41  ;;  %v1903_v35 = vmul.f32 1.442695, %v1812_v47  ;;  %v1700_v46 = vpop.f32.mrf.mxu0 }
 0x276   :  { %v2692_v36 = vpop.eup %2691  ;;  %2717 = vrcp.f32 %v1995_v44  ;;  %v1996_v52 = vadd.f32 1.0, %v2690_v12  ;;  %v1905_v15 = vmul.f32 1.442695, %v1813_v1  ;;  %v1814_v18 = vsub.f32 0.0, %v1699_v19 }
 0x277   :  { %v2694_v13 = vpop.eup %2693  ;;  %2117 = vst [vmem:[#allocation8 + $0x60] sm:$0xff] %v2692_v36  ;;  %2719 = vpow2.f32 %v1903_v35  ;;  %v1701_v55 = vadd.f32 %v1700_v46, %v3268_v28  ;;  %v1702_v49 = vpop.f32.mrf.mxu0 }
 0x278   :  { %v2696_v17 = vpop.eup %2695  ;;  %2721 = vrcp.f32 %v1996_v52  ;;  %v1997_v3 = vadd.f32 1.0, %v2694_v13  ;;  %v1907_v58 = vmul.f32 1.442695, %v1814_v18  ;;  %v1703_v24 = vadd.f32 %v1702_v49, %v3272_v54 }
 0x279   :  { %v2698_v20 = vpop.eup %2697  ;;  %2118 = vst [vmem:[#allocation8 + $0x68] sm:$0xff] %v2696_v17  ;;  %2723 = vpow2.f32 %v1905_v15  ;;  %v1815_v63 = vsub.f32 0.0, %v1701_v55  ;;  %v1706_v51 = vpop.f32.mrf.mxu0 }
 0x27a   :  { %v2700_v23 = vpop.eup %2699  ;;  %2725 = vrcp.f32 %v1997_v3  ;;  %v1998_v22 = vadd.f32 1.0, %v2698_v20  ;;  %v1816_v11 = vsub.f32 0.0, %v1703_v24  ;;  %v1707_v32 = vadd.f32 %v1706_v51, %v3268_v28 }
 0x27b   :  { %v2702_v29 = vpop.eup %2701  ;;  %2119 = vst [vmem:[#allocation8 + $0x70] sm:$0xff] %v2700_v23  ;;  %2727 = vpow2.f32 %v1907_v58  ;;  %v1909_v25 = vmul.f32 1.442695, %v1815_v63  ;;  %v1708_v26 = vpop.f32.mrf.mxu0 }
 0x27c   :  { %v2704_v56 = vpop.eup %2703  ;;  %2729 = vrcp.f32 %v1998_v22  ;;  %v1999_v6 = vadd.f32 1.0, %v2702_v29  ;;  %v1911_v4 = vmul.f32 1.442695, %v1816_v11  ;;  %v1817_v40 = vsub.f32 0.0, %v1707_v32 }
 0x27d   :  { %v2706_v27 = vpop.eup %2705  ;;  %2120 = vst [vmem:[#allocation8 + $0x78] sm:$0xff] %v2704_v56  ;;  %2731 = vpow2.f32 %v1909_v25  ;;  %v1709_v21 = vadd.f32 %v1708_v26, %v3272_v54  ;;  %v1710_v59 = vpop.f32.mrf.mxu0 }
 0x27e   :  { %v2708_v57 = vpop.eup %2707  ;;  %2733 = vrcp.f32 %v1999_v6  ;;  %v2000_v37 = vadd.f32 1.0, %v2706_v27  ;;  %v1913_v30 = vmul.f32 1.442695, %v1817_v40  ;;  %v1711_v60 = vadd.f32 %v1710_v59, %v3268_v28 }
 0x27f   :  { %v2710_v43 = vpop.eup %2709  ;;  %v2001_v61 = vadd.f32 1.0, %v2708_v57  ;;  %2735 = vpow2.f32 %v1911_v4  ;;  %v1818_v39 = vsub.f32 0.0, %v1709_v21  ;;  %v1712_v9 = vpop.f32.mrf.mxu0 }
 0x280   :  { %v2712_v38 = vpop.eup %2711  ;;  %2121 = vst [vmem:[#allocation8 + $0x80] sm:$0xff] %v2710_v43  ;;  %2737 = vrcp.f32 %v2000_v37  ;;  %v1819_v0 = vsub.f32 0.0, %v1711_v60  ;;  %v1713_v33 = vadd.f32 %v1712_v9, %v3272_v54 }
 0x281   :  { %v2714_v48 = vpop.eup %2713  ;;  %2739 = vrcp.f32 %v2001_v61  ;;  %v2002_v16 = vadd.f32 1.0, %v2712_v38  ;;  %v1915_v2 = vmul.f32 1.442695, %v1818_v39  ;;  %v1716_v45 = vpop.f32.mrf.mxu0 }
 0x282   :  { %v2716_v42 = vpop.eup %2715  ;;  %2122 = vst [vmem:[#allocation8 + $0x88] sm:$0xff] %v2714_v48  ;;  %2741 = vpow2.f32 %v1913_v30  ;;  %v1917_v50 = vmul.f32 1.442695, %v1819_v0  ;;  %v1820_v31 = vsub.f32 0.0, %v1713_v33  ;;  %v1717_v5 = vadd.f32 %v1716_v45, %v3268_v28 }
 0x283   :  { %v2718_v34 = vpop.eup %2717  ;;  %2743 = vrcp.f32 %v2002_v16  ;;  %v2003_v14 = vadd.f32 1.0, %v2716_v42  ;;  %v1718_v53 = vpop.f32.mrf.mxu0 }
 0x284   :  { %v2720_v41 = vpop.eup %2719  ;;  %2123 = vst [vmem:[#allocation8 + $0x90] sm:$0xff] %v2718_v34  ;;  %2745 = vpow2.f32 %v1915_v2  ;;  %v1919_v7 = vmul.f32 1.442695, %v1820_v31  ;;  %v1821_v62 = vsub.f32 0.0, %v1717_v5  ;;  %v1719_v47 = vadd.f32 %v1718_v53, %v3272_v54 }
 0x285   :  { %v2722_v8 = vpop.eup %2721  ;;  %2747 = vrcp.f32 %v2003_v14  ;;  %v2004_v10 = vadd.f32 1.0, %v2720_v41  ;;  %v1720_v44 = vpop.f32.mrf.mxu0 }
 0x286   :  { %v2724_v1 = vpop.eup %2723  ;;  %2124 = vst [vmem:[#allocation8 + $0x98] sm:$0xff] %v2722_v8  ;;  %2749 = vpow2.f32 %v1917_v50  ;;  %v1921_v19 = vmul.f32 1.442695, %v1821_v62  ;;  %v1822_v12 = vsub.f32 0.0, %v1719_v47  ;;  %v1721_v35 = vadd.f32 %v1720_v44, %v3268_v28 }
 0x287   :  { %v2726_v46 = vpop.eup %2725  ;;  %2751 = vrcp.f32 %v2004_v10  ;;  %v2005_v36 = vadd.f32 1.0, %v2724_v1  ;;  %v1722_v52 = vpop.f32.mrf.mxu0 }
 0x288   :  { %v2728_v15 = vpop.eup %2727  ;;  %2125 = vst [vmem:[#allocation8 + $0xa0] sm:$0xff] %v2726_v46  ;;  %2753 = vpow2.f32 %v1919_v7  ;;  %v1923_v18 = vmul.f32 1.442695, %v1822_v12  ;;  %v1823_v13 = vsub.f32 0.0, %v1721_v35  ;;  %v1723_v55 = vadd.f32 %v1722_v52, %v3272_v54 }
 0x289   :  { %v2730_v49 = vpop.eup %2729  ;;  %2755 = vrcp.f32 %v2005_v36  ;;  %v2006_v17 = vadd.f32 1.0, %v2728_v15  ;;  %v1726_v3 = vpop.f32.mrf.mxu0 }
 0x28a   :  { %v2732_v58 = vpop.eup %2731  ;;  %2126 = vst [vmem:[#allocation8 + $0xa8] sm:$0xff] %v2730_v49  ;;  %2757 = vpow2.f32 %v1921_v19  ;;  %v1925_v24 = vmul.f32 1.442695, %v1823_v13  ;;  %v1824_v20 = vsub.f32 0.0, %v1723_v55  ;;  %v1727_v63 = vadd.f32 %v1726_v3, %v3268_v28 }
 0x28b   :  { %v2734_v51 = vpop.eup %2733  ;;  %2759 = vrcp.f32 %v2006_v17  ;;  %v2007_v23 = vadd.f32 1.0, %v2732_v58  ;;  %v1728_v22 = vpop.f32.mrf.mxu0 }
 0x28c   :  { %v2736_v11 = vpop.eup %2735  ;;  %2127 = vst [vmem:[#allocation8 + $0xb0] sm:$0xff] %v2734_v51  ;;  %2761 = vpow2.f32 %v1923_v18  ;;  %v1927_v32 = vmul.f32 1.442695, %v1824_v20  ;;  %v1825_v29 = vsub.f32 0.0, %v1727_v63  ;;  %v1729_v25 = vadd.f32 %v1728_v22, %v3272_v54 }
 0x28d   :  { %v2738_v26 = vpop.eup %2737  ;;  %2763 = vrcp.f32 %v2007_v23  ;;  %v2008_v56 = vadd.f32 1.0, %v2736_v11  ;;  %v1730_v6 = vpop.f32.mrf.mxu0 }
 0x28e   :  { %v2740_v4 = vpop.eup %2739  ;;  %2128 = vst [vmem:[#allocation8 + $0xb8] sm:$0xff] %v2738_v26  ;;  %2765 = vpow2.f32 %v1925_v24  ;;  %v1929_v40 = vmul.f32 1.442695, %v1825_v29  ;;  %v1826_v27 = vsub.f32 0.0, %v1729_v25  ;;  %v1731_v21 = vadd.f32 %v1730_v6, %v3268_v28 }
 0x28f   :  { %v2742_v59 = vpop.eup %2741  ;;  %2129 = vst [vmem:[#allocation8 + $0xc0] sm:$0xff] %v2740_v4  ;;  %2767 = vrcp.f32 %v2008_v56  ;;  %v1732_v57 = vpop.f32.mrf.mxu0 }
 0x290   :  { %v2744_v37 = vpop.eup %2743  ;;  %v2009_v30 = vadd.f32 1.0, %v2742_v59  ;;  %2769 = vpow2.f32 %v1927_v32  ;;  %v1931_v60 = vmul.f32 1.442695, %v1826_v27  ;;  %v1827_v43 = vsub.f32 0.0, %v1731_v21 }
 0x291   :  { %v2746_v61 = vpop.eup %2745  ;;  %2130 = vst [vmem:[#allocation8 + $0xc8] sm:$0xff] %v2744_v37  ;;  %2771 = vpow2.f32 %v1929_v40  ;;  %v1733_v39 = vadd.f32 %v1732_v57, %v3272_v54  ;;  %v1736_v9 = vpop.f32.mrf.mxu0 }
 0x292   :  { %v2748_v38 = vpop.eup %2747  ;;  %2773 = vrcp.f32 %v2009_v30  ;;  %v2010_v0 = vadd.f32 1.0, %v2746_v61  ;;  %v1933_v33 = vmul.f32 1.442695, %v1827_v43  ;;  %v1737_v48 = vadd.f32 %v1736_v9, %v3268_v28 }
 0x293   :  { %v2750_v16 = vpop.eup %2749  ;;  %2131 = vst [vmem:[#allocation8 + $0xd0] sm:$0xff] %v2748_v38  ;;  %2775 = vpow2.f32 %v1931_v60  ;;  %v1828_v2 = vsub.f32 0.0, %v1733_v39  ;;  %v1738_v45 = vpop.f32.mrf.mxu0 }
 0x294   :  { %v2752_v42 = vpop.eup %2751  ;;  %2777 = vrcp.f32 %v2010_v0  ;;  %v2011_v50 = vadd.f32 1.0, %v2750_v16  ;;  %v1829_v31 = vsub.f32 0.0, %v1737_v48  ;;  %v1739_v5 = vadd.f32 %v1738_v45, %v3272_v54 }
 0x295   :  { %v2754_v34 = vpop.eup %2753  ;;  %2132 = vst [vmem:[#allocation8 + $0xd8] sm:$0xff] %v2752_v42  ;;  %2779 = vpow2.f32 %v1933_v33  ;;  %v1935_v14 = vmul.f32 1.442695, %v1828_v2  ;;  %v1740_v53 = vpop.f32.mrf.mxu0 }
 0x296   :  { %v2756_v41 = vpop.eup %2755  ;;  %2781 = vrcp.f32 %v2011_v50  ;;  %v2012_v7 = vadd.f32 1.0, %v2754_v34  ;;  %v1937_v62 = vmul.f32 1.442695, %v1829_v31  ;;  %v1830_v47 = vsub.f32 0.0, %v1739_v5 }
 0x297   :  { %v2758_v8 = vpop.eup %2757  ;;  %2133 = vst [vmem:[#allocation8 + $0xe0] sm:$0xff] %v2756_v41  ;;  %2783 = vpow2.f32 %v1935_v14  ;;  %v1741_v10 = vadd.f32 %v1740_v53, %v3268_v28  ;;  %v1742_v44 = vpop.f32.mrf.mxu0 }
 0x298   :  { %v2760_v1 = vpop.eup %2759  ;;  %2785 = vrcp.f32 %v2012_v7  ;;  %v2013_v19 = vadd.f32 1.0, %v2758_v8  ;;  %v1939_v12 = vmul.f32 1.442695, %v1830_v47  ;;  %v1743_v35 = vadd.f32 %v1742_v44, %v3272_v54 }
 0x299   :  { %v2762_v46 = vpop.eup %2761  ;;  %2134 = vst [vmem:[#allocation8 + $0xe8] sm:$0xff] %v2760_v1  ;;  %2787 = vpow2.f32 %v1937_v62  ;;  %v1831_v36 = vsub.f32 0.0, %v1741_v10  ;;  %v1746_v52 = vpop.f32.mrf.mxu0 }
 0x29a   :  { %v2764_v15 = vpop.eup %2763  ;;  %2789 = vrcp.f32 %v2013_v19  ;;  %v2014_v18 = vadd.f32 1.0, %v2762_v46  ;;  %v1832_v13 = vsub.f32 0.0, %v1743_v35  ;;  %v1747_v55 = vadd.f32 %v1746_v52, %v3268_v28 }
 0x29b   :  { %v2766_v49 = vpop.eup %2765  ;;  %2135 = vst [vmem:[#allocation8 + $0xf0] sm:$0xff] %v2764_v15  ;;  %2791 = vpow2.f32 %v1939_v12  ;;  %v1941_v17 = vmul.f32 1.442695, %v1831_v36  ;;  %v1748_v3 = vpop.f32.mrf.mxu0 }
 0x29c   :  { %v2768_v58 = vpop.eup %2767  ;;  %2793 = vrcp.f32 %v2014_v18  ;;  %v2015_v24 = vadd.f32 1.0, %v2766_v49  ;;  %v1943_v20 = vmul.f32 1.442695, %v1832_v13  ;;  %v1833_v63 = vsub.f32 0.0, %v1747_v55 }
 0x29d   :  { %v2770_v51 = vpop.eup %2769  ;;  %2136 = vst [vmem:[#allocation8 + $0xf8] sm:$0xff] %v2768_v58  ;;  %2795 = vpow2.f32 %v1941_v17  ;;  %v1749_v23 = vadd.f32 %v1748_v3, %v3272_v54  ;;  %v1750_v22 = vpop.f32.mrf.mxu0 }
 0x29e   :  { %v2772_v11 = vpop.eup %2771  ;;  %2797 = vrcp.f32 %v2015_v24  ;;  %v2016_v32 = vadd.f32 1.0, %v2770_v51  ;;  %v1945_v29 = vmul.f32 1.442695, %v1833_v63  ;;  %v1751_v25 = vadd.f32 %v1750_v22, %v3268_v28 }
 0x29f   :  { %v2774_v26 = vpop.eup %2773  ;;  %v2017_v56 = vadd.f32 1.0, %v2772_v11  ;;  %2799 = vpow2.f32 %v1943_v20  ;;  %v1834_v6 = vsub.f32 0.0, %v1749_v23  ;;  %v1752_v4 = vpop.f32.mrf.mxu0 }
 0x2a0   :  { %v2776_v40 = vpop.eup %2775  ;;  %2137 = vst [vmem:[#allocation8 + $0x100] sm:$0xff] %v2774_v26  ;;  %2801 = vrcp.f32 %v2016_v32  ;;  %v1835_v27 = vsub.f32 0.0, %v1751_v25  ;;  %v1753_v21 = vadd.f32 %v1752_v4, %v3272_v54 }
 0x2a1   :  { %v2778_v59 = vpop.eup %2777  ;;  %2803 = vrcp.f32 %v2017_v56  ;;  %v2018_v57 = vadd.f32 1.0, %v2776_v40  ;;  %v1947_v37 = vmul.f32 1.442695, %v1834_v6  ;;  %v1756_v30 = vpop.f32.mrf.mxu0 }
 0x2a2   :  { %v2780_v60 = vpop.eup %2779  ;;  %2138 = vst [vmem:[#allocation8 + $0x108] sm:$0xff] %v2778_v59  ;;  %2805 = vpow2.f32 %v1945_v29  ;;  %v1949_v43 = vmul.f32 1.442695, %v1835_v27  ;;  %v1836_v61 = vsub.f32 0.0, %v1753_v21  ;;  %v1757_v39 = vadd.f32 %v1756_v30, %v3268_v28 }
 0x2a3   :  { %v2782_v9 = vpop.eup %2781  ;;  %2807 = vrcp.f32 %v2018_v57  ;;  %v2019_v38 = vadd.f32 1.0, %v2780_v60  ;;  %v1758_v0 = vpop.f32.mrf.mxu0 }
 0x2a4   :  { %v2784_v33 = vpop.eup %2783  ;;  %2139 = vst [vmem:[#allocation8 + $0x110] sm:$0xff] %v2782_v9  ;;  %2809 = vpow2.f32 %v1947_v37  ;;  %v1951_v48 = vmul.f32 1.442695, %v1836_v61  ;;  %v1837_v16 = vsub.f32 0.0, %v1757_v39  ;;  %v1759_v2 = vadd.f32 %v1758_v0, %v3272_v54 }
 0x2a5   :  { %v2786_v45 = vpop.eup %2785  ;;  %2811 = vrcp.f32 %v2019_v38  ;;  %v2020_v42 = vadd.f32 1.0, %v2784_v33  ;;  %v1760_v50 = vpop.f32.mrf.mxu0 }
 0x2a6   :  { %v2788_v31 = vpop.eup %2787  ;;  %2140 = vst [vmem:[#allocation8 + $0x118] sm:$0xff] %v2786_v45  ;;  %2813 = vpow2.f32 %v1949_v43  ;;  %v1953_v5 = vmul.f32 1.442695, %v1837_v16  ;;  %v1838_v34 = vsub.f32 0.0, %v1759_v2  ;;  %v1761_v14 = vadd.f32 %v1760_v50, %v3268_v28 }
 0x2a7   :  { %v2790_v53 = vpop.eup %2789  ;;  %2815 = vrcp.f32 %v2020_v42  ;;  %v2021_v41 = vadd.f32 1.0, %v2788_v31  ;;  %v1762_v7 = vpop.f32.mrf.mxu0 }
 0x2a8   :  { %v2792_v62 = vpop.eup %2791  ;;  %2141 = vst [vmem:[#allocation8 + $0x120] sm:$0xff] %v2790_v53  ;;  %2817 = vpow2.f32 %v1951_v48  ;;  %v1955_v47 = vmul.f32 1.442695, %v1838_v34  ;;  %v1839_v8 = vsub.f32 0.0, %v1761_v14  ;;  %v1763_v10 = vadd.f32 %v1762_v7, %v3272_v54 }
 0x2a9   :  { %v2794_v44 = vpop.eup %2793  ;;  %2819 = vrcp.f32 %v2021_v41  ;;  %v2022_v1 = vadd.f32 1.0, %v2792_v62  ;;  %v1766_v19 = vpop.f32.mrf.mxu0 }
 0x2aa   :  { %v2796_v12 = vpop.eup %2795  ;;  %2142 = vst [vmem:[#allocation8 + $0x128] sm:$0xff] %v2794_v44  ;;  %2821 = vpow2.f32 %v1953_v5  ;;  %v1957_v35 = vmul.f32 1.442695, %v1839_v8  ;;  %v1840_v46 = vsub.f32 0.0, %v1763_v10  ;;  %v1767_v36 = vadd.f32 %v1766_v19, %v3268_v28 }
 0x2ab   :  { %v2798_v52 = vpop.eup %2797  ;;  %2823 = vrcp.f32 %v2022_v1  ;;  %v2023_v15 = vadd.f32 1.0, %v2796_v12  ;;  %v1768_v18 = vpop.f32.mrf.mxu0 }
 0x2ac   :  { %v2800_v13 = vpop.eup %2799  ;;  %2143 = vst [vmem:[#allocation8 + $0x130] sm:$0xff] %v2798_v52  ;;  %2825 = vpow2.f32 %v1955_v47  ;;  %v1959_v55 = vmul.f32 1.442695, %v1840_v46  ;;  %v1841_v49 = vsub.f32 0.0, %v1767_v36  ;;  %v1769_v17 = vadd.f32 %v1768_v18, %v3272_v54 }
 0x2ad   :  { %v2802_v3 = vpop.eup %2801  ;;  %2827 = vrcp.f32 %v2023_v15  ;;  %v2024_v58 = vadd.f32 1.0, %v2800_v13  ;;  %v1770_v24 = vpop.f32.mrf.mxu0 }
 0x2ae   :  { %v2804_v20 = vpop.eup %2803  ;;  %2144 = vst [vmem:[#allocation8 + $0x138] sm:$0xff] %v2802_v3  ;;  %2829 = vpow2.f32 %v1957_v35  ;;  %v1961_v63 = vmul.f32 1.442695, %v1841_v49  ;;  %v1842_v51 = vsub.f32 0.0, %v1769_v17  ;;  %v1771_v23 = vadd.f32 %v1770_v24, %v3268_v28 }
 0x2af   :  { %v2806_v22 = vpop.eup %2805  ;;  %2145 = vst [vmem:[#allocation8 + $0x140] sm:$0xff] %v2804_v20  ;;  %2831 = vrcp.f32 %v2024_v58  ;;  %v1772_v11 = vpop.f32.mrf.mxu0 }
 0x2b0   :  { %v2808_v32 = vpop.eup %2807  ;;  %v2025_v29 = vadd.f32 1.0, %v2806_v22  ;;  %2833 = vpow2.f32 %v1959_v55  ;;  %v1963_v25 = vmul.f32 1.442695, %v1842_v51  ;;  %v1843_v26 = vsub.f32 0.0, %v1771_v23 }
 0x2b1   :  { %v2810_v56 = vpop.eup %2809  ;;  %2146 = vst [vmem:[#allocation8 + $0x148] sm:$0xff] %v2808_v32  ;;  %2835 = vpow2.f32 %v1961_v63  ;;  %v1773_v6 = vadd.f32 %v1772_v11, %v3272_v54  ;;  %v1776_v4 = vpop.f32.mrf.mxu0 }
 0x2b2   :  { %v2812_v40 = vpop.eup %2811  ;;  %2837 = vrcp.f32 %v2025_v29  ;;  %v2026_v27 = vadd.f32 1.0, %v2810_v56  ;;  %v1965_v21 = vmul.f32 1.442695, %v1843_v26  ;;  %v1777_v59 = vadd.f32 %v1776_v4, %v3268_v28 }
 0x2b3   :  { %v2814_v57 = vpop.eup %2813  ;;  %2147 = vst [vmem:[#allocation8 + $0x150] sm:$0xff] %v2812_v40  ;;  %2839 = vpow2.f32 %v1963_v25  ;;  %v1844_v37 = vsub.f32 0.0, %v1773_v6  ;;  %v1778_v30 = vpop.f32.mrf.mxu0 }
 0x2b4   :  { %v2816_v60 = vpop.eup %2815  ;;  %2841 = vrcp.f32 %v2026_v27  ;;  %v2027_v43 = vadd.f32 1.0, %v2814_v57  ;;  %v1845_v61 = vsub.f32 0.0, %v1777_v59  ;;  %v1779_v39 = vadd.f32 %v1778_v30, %v3272_v54 }
 0x2b5   :  { %v2818_v9 = vpop.eup %2817  ;;  %2148 = vst [vmem:[#allocation8 + $0x158] sm:$0xff] %v2816_v60  ;;  %2843 = vpow2.f32 %v1965_v21  ;;  %v1967_v38 = vmul.f32 1.442695, %v1844_v37  ;;  %v1780_v0 = vpop.f32.mrf.mxu0 }
 0x2b6   :  { %v2820_v33 = vpop.eup %2819  ;;  %2845 = vrcp.f32 %v2027_v43  ;;  %v2028_v48 = vadd.f32 1.0, %v2818_v9  ;;  %v1969_v16 = vmul.f32 1.442695, %v1845_v61  ;;  %v1846_v2 = vsub.f32 0.0, %v1779_v39 }
 0x2b7   :  { %v2822_v45 = vpop.eup %2821  ;;  %2149 = vst [vmem:[#allocation8 + $0x160] sm:$0xff] %v2820_v33  ;;  %2847 = vpow2.f32 %v1967_v38  ;;  %v1781_v42 = vadd.f32 %v1780_v0, %v3268_v28  ;;  %v1782_v50 = vpop.f32.mrf.mxu0 }
 0x2b8   :  { %v2824_v31 = vpop.eup %2823  ;;  %2849 = vrcp.f32 %v2028_v48  ;;  %v2029_v5 = vadd.f32 1.0, %v2822_v45  ;;  %v1971_v34 = vmul.f32 1.442695, %v1846_v2  ;;  %v1783_v14 = vadd.f32 %v1782_v50, %v3272_v54 }
 0x2b9   :  { %v2826_v53 = vpop.eup %2825  ;;  %2150 = vst [vmem:[#allocation8 + $0x168] sm:$0xff] %v2824_v31  ;;  %2851 = vpow2.f32 %v1969_v16  ;;  %v1847_v41 = vsub.f32 0.0, %v1781_v42 }
 0x2ba   :  { %v2828_v7 = vpop.eup %2827  ;;  %2853 = vrcp.f32 %v2029_v5  ;;  %v2030_v62 = vadd.f32 1.0, %v2826_v53  ;;  %v1848_v47 = vsub.f32 0.0, %v1783_v14 }
 0x2bb   :  { %v2830_v8 = vpop.eup %2829  ;;  %2151 = vst [vmem:[#allocation8 + $0x170] sm:$0xff] %v2828_v7  ;;  %2855 = vpow2.f32 %v1971_v34  ;;  %v1973_v10 = vmul.f32 1.442695, %v1847_v41 }
 0x2bc   :  { %v2832_v28 = vpop.eup %2831  ;;  %2857 = vrcp.f32 %v2030_v62  ;;  %v2031_v44 = vadd.f32 1.0, %v2830_v8  ;;  %v1975_v1 = vmul.f32 1.442695, %v1848_v47 }
 0x2bd   :  { %v2834_v19 = vpop.eup %2833  ;;  %2152 = vst [vmem:[#allocation8 + $0x178] sm:$0xff] %v2832_v28  ;;  %2859 = vpow2.f32 %v1973_v10 }
 0x2be   :  { %v2836_v54 = vpop.eup %2835  ;;  %2861 = vrcp.f32 %v2031_v44  ;;  %v2032_v12 = vadd.f32 1.0, %v2834_v19 }
 0x2bf   :  { %v2838_v35 = vpop.eup %2837  ;;  %v2033_v46 = vadd.f32 1.0, %v2836_v54  ;;  %2863 = vpow2.f32 %v1975_v1 }
 0x2c0   :  { %v2840_v36 = vpop.eup %2839  ;;  %2153 = vst [vmem:[#allocation8 + $0x180] sm:$0xff] %v2838_v35  ;;  %2865 = vrcp.f32 %v2032_v12 }
 0x2c1   :  { %v2842_v52 = vpop.eup %2841  ;;  %2867 = vrcp.f32 %v2033_v46  ;;  %v2034_v15 = vadd.f32 1.0, %v2840_v36 }
 0x2c2   :  { %v2844_v18 = vpop.eup %2843  ;;  %2154 = vst [vmem:[#allocation8 + $0x188] sm:$0xff] %v2842_v52 }
 0x2c3   :  { %v2846_v13 = vpop.eup %2845  ;;  %2869 = vrcp.f32 %v2034_v15  ;;  %v2035_v55 = vadd.f32 1.0, %v2844_v18 }
 0x2c4   :  { %v2848_v49 = vpop.eup %2847  ;;  %2155 = vst [vmem:[#allocation8 + $0x190] sm:$0xff] %v2846_v13 }
 0x2c5   :  { %v2850_v17 = vpop.eup %2849  ;;  %2871 = vrcp.f32 %v2035_v55  ;;  %v2036_v3 = vadd.f32 1.0, %v2848_v49 }
 0x2c6   :  { %v2852_v58 = vpop.eup %2851  ;;  %2156 = vst [vmem:[#allocation8 + $0x198] sm:$0xff] %v2850_v17 }
 0x2c7   :  { %v2854_v24 = vpop.eup %2853  ;;  %2873 = vrcp.f32 %v2036_v3  ;;  %v2037_v20 = vadd.f32 1.0, %v2852_v58 }
 0x2c8   :  { %v2856_v63 = vpop.eup %2855  ;;  %2157 = vst [vmem:[#allocation8 + $0x1a0] sm:$0xff] %v2854_v24 }
 0x2c9   :  { %v2858_v51 = vpop.eup %2857  ;;  %2875 = vrcp.f32 %v2037_v20  ;;  %v2038_v23 = vadd.f32 1.0, %v2856_v63 }
 0x2ca   :  { %v2860_v22 = vpop.eup %2859  ;;  %2158 = vst [vmem:[#allocation8 + $0x1a8] sm:$0xff] %v2858_v51 }
 0x2cb   :  { %v2862_v11 = vpop.eup %2861  ;;  %2877 = vrcp.f32 %v2038_v23  ;;  %v2039_v32 = vadd.f32 1.0, %v2860_v22 }
 0x2cc   :  { %v2864_v29 = vpop.eup %2863  ;;  %2159 = vst [vmem:[#allocation8 + $0x1b0] sm:$0xff] %v2862_v11 }
 0x2cd   :  { %v2866_v25 = vpop.eup %2865  ;;  %2879 = vrcp.f32 %v2039_v32  ;;  %v2040_v26 = vadd.f32 1.0, %v2864_v29 }
 0x2ce   :  { %v2868_v56 = vpop.eup %2867  ;;  %2160 = vst [vmem:[#allocation8 + $0x1b8] sm:$0xff] %v2866_v25 }
 0x2cf   :  { %2161 = vst [vmem:[#allocation8 + $0x1c0] sm:$0xff] %v2868_v56  ;;  %2881 = vrcp.f32 %v2040_v26 }
 0x2d0   :  { %v2870_v6 = vpop.eup %2869 }
 0x2d1   :  { %2162 = vst [vmem:[#allocation8 + $0x1c8] sm:$0xff] %v2870_v6 }
 0x2d2   :  { %v2872_v4 = vpop.eup %2871 }
 0x2d3   :  { %2163 = vst [vmem:[#allocation8 + $0x1d0] sm:$0xff] %v2872_v4 }
 0x2d4   :  { %v2874_v40 = vpop.eup %2873 }
 0x2d5   :  { %2164 = vst [vmem:[#allocation8 + $0x1d8] sm:$0xff] %v2874_v40 }
 0x2d6   :  { %v2876_v27 = vpop.eup %2875 }
 0x2d7   :  { %2165 = vst [vmem:[#allocation8 + $0x1e0] sm:$0xff] %v2876_v27 }
 0x2d8   :  { %v2878_v21 = vpop.eup %2877 }
 0x2d9   :  { %2166 = vst [vmem:[#allocation8 + $0x1e8] sm:$0xff] %v2878_v21 }
 0x2da   :  { %v2880_v59 = vpop.eup %2879 }
 0x2db   :  { %2167 = vst [vmem:[#allocation8 + $0x1f0] sm:$0xff] %v2880_v59 }
 0x2dc   :  { %v2882_v57 = vpop.eup %2881 }
 0x2dd   :  { %2168 = vst [vmem:[#allocation8 + $0x1f8] sm:$0xff] %v2882_v57 }
 0x2de   :  { %2954 = shalt.err (!%p2951_p5)
}
 0x2df   :  { %2180 = dma.vmem_to_hbm [thread:$0]  %s2175_s12, 8192, %s3349_s5, [#allocation4], %s2973_s28, %s2973_s28, %s2974_s29  }
 0x2e0   :  { %2967 = dma.done.wait [#allocation4], 8192  }
 0x2e1   :  { %2968 = vsyncadd [#allocation4], 4294959104 }
 0x2e2   :  { %2184 = vsyncpa [#allocation3], 1 }
 0x2e3   :  { %2185 = vsyncpa [#allocation6], 1 }
 0x2e4   :  { %2186 = vsyncpa [#allocation4], 1 }

</bundles_post_ra>
